<compile_context>
chip_gen: v7x
topology: tpu7x:2x2x1
jax: 0.10.0
libtpu: 0.0.40
codegen_flags: <defaults>
</compile_context>

<pallas_src>
import numpy as np

import jax
import jax.numpy as jnp
from jax.experimental import pallas as pl
from jax.experimental.pallas import tpu as pltpu

# ---- model hyper-parameters (small, consistent with the module defaults) ----
VOCAB = 50
N_EMB = 32          # n_emb   (default 300, shrunk)
N_FILTERS = 16      # n_filters (default 128, shrunk)
NGRAM = 3           # ngram_len
MU = [-0.9, -0.4, 0.0, 0.4, 0.8, 1.0]
SIGMA = [0.1, 0.1, 0.1, 0.1, 0.1, 0.001]
N_BINS = len(MU)
N_PAIRS = NGRAM * NGRAM
N_FEATS = N_PAIRS * N_BINS          # 54
EPS = 1e-12

LQ = 8              # query length
LD = 16             # doc length
LQP = LQ + NGRAM - 1                # 10 (right zero-padded)
LDP = LD + NGRAM - 1                # 18

SIM_LANES = N_PAIRS * LD            # 144 : lane = g1*(NGRAM*LD) + g2*LD + d
RBF_LANES = N_BINS * SIM_LANES      # 864 : lane = bin*SIM_LANES + sim lane

TB_MAX = 128        # batch elements folded into one grid step


def _build_tables():
    """Constant 0/1 reduction / broadcast matrices + lane-resident mu,coef."""
    rmat = np.zeros((RBF_LANES, N_FEATS), np.float32)   # (bin,pair,d) -> feat
    rmask = np.zeros((SIM_LANES, N_PAIRS), np.float32)  # (pair,d)     -> pair
    for g1 in range(NGRAM):
        for g2 in range(NGRAM):
            pair = g1 * NGRAM + g2
            s = g1 * NGRAM * LD + g2 * LD
            rmask[s:s + LD, pair] = 1.0
            for b in range(N_BINS):
                rmat[b * SIM_LANES + s:b * SIM_LANES + s + LD,
                     pair * N_BINS + b] = 1.0
    m954 = np.zeros((N_PAIRS, N_FEATS), np.float32)     # pair -> its 6 bins
    for pair in range(N_PAIRS):
        m954[pair, pair * N_BINS:(pair + 1) * N_BINS] = 1.0
    muc = np.zeros((2, RBF_LANES), np.float32)          # row0: mu, row1: coef
    for b in range(N_BINS):
        muc[0, b * SIM_LANES:(b + 1) * SIM_LANES] = MU[b]
        muc[1, b * SIM_LANES:(b + 1) * SIM_LANES] = -0.5 / (np.float32(SIGMA[b]) ** 2)
    return rmat, rmask, m954, muc


_RMAT, _RMASK, _M954, _MUC = _build_tables()


def conv_knrm_kernel(qe_ref, de_ref, w_ref, rmat_ref, rmask_ref, m954_ref,
                     muc_ref, fcw_ref, fcb_ref, o_ref):
    """One grid step processes TB batch elements (batch folded into M).

    qe_ref : (TB, LQP, N_EMB)   right-zero-padded query embeddings
    de_ref : (TB, LDP, N_EMB)   right-zero-padded doc embeddings
    w_ref  : (3*N_EMB, 3*N_FILTERS) packed conv taps (K-stacked, N-stacked)
    rmat_ref / rmask_ref / m954_ref / muc_ref : constant tables (VMEM)
    fcw_ref: (1, N_FEATS) fc weight (VMEM lane vector)
    fcb_ref: (1,) fc bias (SMEM)
    o_ref  : (1, 1, TB) scores (lane-dense)
    """
    tb = qe_ref.shape[0]
    qe = qe_ref[...]
    de = de_ref[...]

    # --- fused n-gram convs: taps stacked along K, n-gram groups along N ----
    qwin = jnp.concatenate([qe[:, j:j + LQ, :] for j in range(NGRAM)],
                           axis=-1).reshape(tb * LQ, NGRAM * N_EMB)
    dwin = jnp.concatenate([de[:, j:j + LD, :] for j in range(NGRAM)],
                           axis=-1).reshape(tb * LD, NGRAM * N_EMB)
    w = w_ref[...]
    xg = jnp.dot(qwin, w, preferred_element_type=jnp.float32)   # (TB*LQ, 48)
    yg = jnp.dot(dwin, w, preferred_element_type=jnp.float32)   # (TB*LD, 48)

    # --- per-n-gram L2 normalize (exact f32) + regroup for similarity -------
    xs = []        # per g1: (TB, LQ, F)
    ycat = []      # per g2: (TB, LD, F)
    for g in range(NGRAM):
        xg_g = xg[:, g * N_FILTERS:(g + 1) * N_FILTERS]
        yg_g = yg[:, g * N_FILTERS:(g + 1) * N_FILTERS]
        xn_g = xg_g / jnp.maximum(
            jnp.sqrt(jnp.sum(xg_g * xg_g, axis=-1, keepdims=True)), EPS)
        yn_g = yg_g / jnp.maximum(
            jnp.sqrt(jnp.sum(yg_g * yg_g, axis=-1, keepdims=True)), EPS)
        xs.append(xn_g.reshape(tb, LQ, N_FILTERS))
        ycat.append(yn_g.reshape(tb, LD, N_FILTERS))
    ycat = jnp.concatenate(ycat, axis=1)          # (TB, 3*LD, F) rows = g2*LD+d

    # --- all 9 cosine-sim tiles: 3 batched matmuls, lanes = g1*48+g2*16+d ---
    sim = jnp.concatenate(
        [jnp.einsum('bqf,bdf->bqd', xs[g1], ycat,
                    preferred_element_type=jnp.float32)
         for g1 in range(NGRAM)],
        axis=-1)                                  # (TB, LQ, 144)
    sim2 = sim.reshape(tb * LQ, SIM_LANES)

    # --- mask: per (b, q, pair) row-sum over doc positions != 0 -------------
    rowsum = jnp.dot(sim2, rmask_ref[...], preferred_element_type=jnp.float32)
    mask = jnp.dot((rowsum != 0.0).astype(jnp.float32), m954_ref[...],
                   preferred_element_type=jnp.float32)           # (TB*LQ, 54)

    # --- RBF kernels: all 6 bins x 9 pairs in one exp + one reduction matmul
    mu = muc_ref[0:1, :].reshape(1, 1, RBF_LANES)
    coef = muc_ref[1:2, :].reshape(1, 1, RBF_LANES)              # -0.5/sigma^2
    simt = jnp.concatenate([sim] * N_BINS, axis=-1)              # (TB, LQ, 864)
    kb = jnp.exp((simt - mu) ** 2 * coef)
    ks = jnp.dot(kb.reshape(tb * LQ, RBF_LANES), rmat_ref[...],
                 preferred_element_type=jnp.float32)             # (TB*LQ, 54)

    # --- soft-TF pooling over query positions (sublane reductions) ----------
    ks3 = ks.reshape(tb, LQ, N_FEATS)
    ksm3 = (ks * mask).reshape(tb, LQ, N_FEATS)
    mx = jnp.max(ks3, axis=1) + EPS                              # (TB, 54)
    pooled = 0.5 * jnp.sum(ksm3, axis=1) / mx                    # (TB, 54)

    # --- Linear(54 -> 1) + tanh, one vector dot, lane-dense (1, TB) output --
    scores = jax.lax.dot_general(fcw_ref[...], pooled,
                                 (((1,), (1,)), ((), ())),
                                 preferred_element_type=jnp.float32)  # (1, TB)
    o_ref[0] = jnp.tanh(scores + fcb_ref[0])


def _round_up(x, m):
    return ((x + m - 1) // m) * m


@jax.jit
def conv_knrm_forward(query, doc, emb, w_packed, fc_w, fc_b):
    B = query.shape[0]
    tb = min(TB_MAX, B)                 # batch elements per grid step
    bp = _round_up(B, tb)
    nblk = bp // tb

    # glue: embedding gather + right zero-pad + batch pad (plain JAX).
    # TODO(synk): fold the embedding gather in-kernel via scalar prefetch;
    # at these sizes the HBM round-trip is negligible.
    qpad = jnp.pad(query, ((0, bp - B), (0, 0)))
    dpad = jnp.pad(doc, ((0, bp - B), (0, 0)))
    qe = jnp.pad(emb[qpad], ((0, 0), (0, NGRAM - 1), (0, 0)))
    de = jnp.pad(emb[dpad], ((0, 0), (0, NGRAM - 1), (0, 0)))

    # conv taps packed: rows = j*N_EMB+e, cols = g*N_FILTERS+f (zero taps kept)
    w_stack = jnp.transpose(w_packed, (1, 2, 0, 3)).reshape(
        NGRAM * N_EMB, NGRAM * N_FILTERS)

    out = pl.pallas_call(
        conv_knrm_kernel,
        out_shape=jax.ShapeDtypeStruct((nblk, 1, tb), jnp.float32),
        grid=(nblk,),
        in_specs=[
            pl.BlockSpec((tb, LQP, N_EMB), lambda b: (b, 0, 0)),
            pl.BlockSpec((tb, LDP, N_EMB), lambda b: (b, 0, 0)),
            pl.BlockSpec((NGRAM * N_EMB, NGRAM * N_FILTERS), lambda b: (0, 0)),
            pl.BlockSpec((RBF_LANES, N_FEATS), lambda b: (0, 0)),
            pl.BlockSpec((SIM_LANES, N_PAIRS), lambda b: (0, 0)),
            pl.BlockSpec((N_PAIRS, N_FEATS), lambda b: (0, 0)),
            pl.BlockSpec((2, RBF_LANES), lambda b: (0, 0)),
            pl.BlockSpec((1, N_FEATS), lambda b: (0, 0)),
            pl.BlockSpec(memory_space=pltpu.MemorySpace.SMEM),
        ],
        out_specs=pl.BlockSpec((1, 1, tb), lambda b: (b, 0, 0)),
        compiler_params=pltpu.CompilerParams(
            dimension_semantics=("parallel",),
            vmem_limit_bytes=48 * 1024 * 1024),
    )(qe, de, w_stack,
      jnp.asarray(_RMAT), jnp.asarray(_RMASK), jnp.asarray(_M954),
      jnp.asarray(_MUC), fc_w.reshape(1, N_FEATS), fc_b)
    return out.reshape(bp, 1)[:B]


def reference_forward(query, doc, emb, w_packed, fc_w, fc_b):
    """Pure-JAX mirror of the PyTorch forward (for correctness check)."""
    qe = jnp.pad(emb[query], ((0, 0), (0, NGRAM - 1), (0, 0)))
    de = jnp.pad(emb[doc], ((0, 0), (0, NGRAM - 1), (0, 0)))
    xs, ys = [], []
    for g in range(NGRAM):
        xg = sum(jnp.einsum('ble,ef->blf', qe[:, j:j + LQ, :], w_packed[g, j])
                 for j in range(NGRAM))
        yg = sum(jnp.einsum('ble,ef->blf', de[:, j:j + LD, :], w_packed[g, j])
                 for j in range(NGRAM))
        xn = xg / jnp.maximum(
            jnp.sqrt(jnp.sum(xg * xg, axis=2, keepdims=True)), EPS)
        yn = yg / jnp.maximum(
            jnp.sqrt(jnp.sum(yg * yg, axis=2, keepdims=True)), EPS)
        xs.append(xn)
        ys.append(yn)
    mu = jnp.asarray(MU, jnp.float32)
    sg = jnp.asarray(SIGMA, jnp.float32)
    feats = []
    for g1 in range(NGRAM):
        for g2 in range(NGRAM):
            mat = jnp.einsum('bqf,bdf->bqd', xs[g1], ys[g2])      # (B,LQ,LD)
            mask = (jnp.sum(mat, axis=2) != 0).astype(jnp.float32)  # (B,LQ)
            kx = jnp.exp(-(mat[..., None] - mu) ** 2 / sg ** 2 / 2.0)
            ks = kx.sum(axis=2)                                    # (B,LQ,NB)
            mx = jnp.max(ks, axis=1, keepdims=True) + EPS
            p = (0.5 * ks / mx) * mask[..., None]
            feats.append(p.sum(axis=1))                            # (B,NB)
    feat = jnp.concatenate(feats, axis=1)                          # (B,54)
    return jnp.tanh(feat @ fc_w[:, None] + fc_b)


def init_params(key):
    keys = jax.random.split(key, 6)
    emb = (jax.random.normal(keys[0], (VOCAB, N_EMB), jnp.float32) * 0.1)
    # packed conv weights: w_packed[g, j] = conv_g.weight[:, :, j].T
    # (zero for j >= g+1, preserving per-n-gram Conv1d semantics)
    w_packed = jnp.zeros((NGRAM, NGRAM, N_EMB, N_FILTERS), jnp.float32)
    for g in range(NGRAM):
        ksz = g + 1
        wg = jax.random.normal(keys[1 + g], (N_FILTERS, N_EMB, ksz),
                               jnp.float32) * 0.1
        for j in range(ksz):
            w_packed = w_packed.at[g, j].set(wg[:, :, j].T)
    fc_w = jax.random.normal(keys[4], (N_FEATS,), jnp.float32) * 0.1
    fc_b = jax.random.normal(keys[5], (1,), jnp.float32) * 0.01
    return emb, w_packed, fc_w, fc_b


if __name__ == "__main__":
    key = jax.random.PRNGKey(0)
    k_emb, k_q, k_d = jax.random.split(key, 3)
    emb, w_packed, fc_w, fc_b = init_params(k_emb)

    B = 2
    query = jax.random.randint(k_q, (B, LQ), 0, VOCAB, dtype=jnp.int32)
    doc = jax.random.randint(k_d, (B, LD), 0, VOCAB, dtype=jnp.int32)

    out = conv_knrm_forward(query, doc, emb, w_packed, fc_w, fc_b)
    out = jax.block_until_ready(out)

    ref = reference_forward(query, doc, emb, w_packed, fc_w, fc_b)
    assert out.shape == (B, 1), out.shape
    assert jnp.allclose(out, ref, atol=3e-3, rtol=3e-3), (out, ref)

    print("KERNEL_OK")
</pallas_src>

<mosaic_0001>
module attributes {stable_mosaic.version = 11 : i64} {
  func.func @conv_knrm_kernel(%arg0: i32, %arg1: memref<2x10x32xf32, #tpu.memory_space<vmem>>, %arg2: memref<2x18x32xf32, #tpu.memory_space<vmem>>, %arg3: memref<96x48xf32, #tpu.memory_space<vmem>>, %arg4: memref<864x54xf32, #tpu.memory_space<vmem>>, %arg5: memref<144x9xf32, #tpu.memory_space<vmem>>, %arg6: memref<9x54xf32, #tpu.memory_space<vmem>>, %arg7: memref<2x864xf32, #tpu.memory_space<vmem>>, %arg8: memref<1x54xf32, #tpu.memory_space<vmem>>, %arg9: memref<1xf32, #tpu.memory_space<smem>>, %arg10: memref<1x1x2xf32, #tpu.memory_space<vmem>>) attributes {dimension_semantics = [#tpu.dimension_semantics<parallel>], iteration_bounds = array<i64: 1>, scalar_prefetch = 0 : i64, scratch_operands = 0 : i64, tpu.core_type = #tpu.core_type<tc>, window_params = [{transform_indices = @transform_0, window_bounds = array<i64: 2, 10, 32>}, {transform_indices = @transform_1, window_bounds = array<i64: 2, 18, 32>}, {pipeline_mode = #tpu.pipeline_mode<synchronous>, transform_indices = @transform_2, window_bounds = array<i64: 96, 48>}, {pipeline_mode = #tpu.pipeline_mode<synchronous>, transform_indices = @transform_3, window_bounds = array<i64: 864, 54>}, {pipeline_mode = #tpu.pipeline_mode<synchronous>, transform_indices = @transform_4, window_bounds = array<i64: 144, 9>}, {pipeline_mode = #tpu.pipeline_mode<synchronous>, transform_indices = @transform_5, window_bounds = array<i64: 9, 54>}, {pipeline_mode = #tpu.pipeline_mode<synchronous>, transform_indices = @transform_6, window_bounds = array<i64: 2, 864>}, {pipeline_mode = #tpu.pipeline_mode<synchronous>, transform_indices = @transform_7, window_bounds = array<i64: 1, 54>}, {transform_indices = @transform_8, window_bounds = array<i64: 1>}, {transform_indices = @transform_9, window_bounds = array<i64: 1, 1, 2>}]} {
    %c0 = arith.constant 0 : index
    %c0_0 = arith.constant 0 : index
    %c0_1 = arith.constant 0 : index
    %0 = vector.load %arg1[%c0, %c0_0, %c0_1] : memref<2x10x32xf32, #tpu.memory_space<vmem>>, vector<2x10x32xf32>
    %c0_2 = arith.constant 0 : index
    %c0_3 = arith.constant 0 : index
    %c0_4 = arith.constant 0 : index
    %1 = vector.load %arg2[%c0_2, %c0_3, %c0_4] : memref<2x18x32xf32, #tpu.memory_space<vmem>>, vector<2x18x32xf32>
    %2 = vector.extract_strided_slice %0 {offsets = [0, 0, 0], sizes = [2, 8, 32], strides = [1, 1, 1]} : vector<2x10x32xf32> to vector<2x8x32xf32>
    %3 = vector.extract_strided_slice %0 {offsets = [0, 1, 0], sizes = [2, 8, 32], strides = [1, 1, 1]} : vector<2x10x32xf32> to vector<2x8x32xf32>
    %4 = vector.extract_strided_slice %0 {offsets = [0, 2, 0], sizes = [2, 8, 32], strides = [1, 1, 1]} : vector<2x10x32xf32> to vector<2x8x32xf32>
    %5 = tpu.concatenate %2, %3, %4 in 2 : vector<2x8x32xf32>, vector<2x8x32xf32>, vector<2x8x32xf32> -> vector<2x8x96xf32>
    %6 = vector.shape_cast %5 : vector<2x8x96xf32> to vector<16x96xf32>
    %7 = vector.extract_strided_slice %1 {offsets = [0, 0, 0], sizes = [2, 16, 32], strides = [1, 1, 1]} : vector<2x18x32xf32> to vector<2x16x32xf32>
    %8 = vector.extract_strided_slice %1 {offsets = [0, 1, 0], sizes = [2, 16, 32], strides = [1, 1, 1]} : vector<2x18x32xf32> to vector<2x16x32xf32>
    %9 = vector.extract_strided_slice %1 {offsets = [0, 2, 0], sizes = [2, 16, 32], strides = [1, 1, 1]} : vector<2x18x32xf32> to vector<2x16x32xf32>
    %10 = tpu.concatenate %7, %8, %9 in 2 : vector<2x16x32xf32>, vector<2x16x32xf32>, vector<2x16x32xf32> -> vector<2x16x96xf32>
    %11 = vector.shape_cast %10 : vector<2x16x96xf32> to vector<32x96xf32>
    %c0_5 = arith.constant 0 : index
    %c0_6 = arith.constant 0 : index
    %12 = vector.load %arg3[%c0_5, %c0_6] : memref<96x48xf32, #tpu.memory_space<vmem>>, vector<96x48xf32>
    %cst = arith.constant dense<0.000000e+00> : vector<16x48xf32>
    %13 = tpu.matmul %6, %12, %cst {dimension_numbers = #tpu.dot_dimension_numbers<[1], [0], [0], [1], [0, 0, 1, 1], [], []>} : vector<16x96xf32>, vector<96x48xf32>, vector<16x48xf32> -> vector<16x48xf32>
    %cst_7 = arith.constant dense<0.000000e+00> : vector<32x48xf32>
    %14 = tpu.matmul %11, %12, %cst_7 {dimension_numbers = #tpu.dot_dimension_numbers<[1], [0], [0], [1], [0, 0, 1, 1], [], []>} : vector<32x96xf32>, vector<96x48xf32>, vector<32x48xf32> -> vector<32x48xf32>
    %15 = vector.extract_strided_slice %13 {offsets = [0, 0], sizes = [16, 16], strides = [1, 1]} : vector<16x48xf32> to vector<16x16xf32>
    %16 = vector.extract_strided_slice %14 {offsets = [0, 0], sizes = [32, 16], strides = [1, 1]} : vector<32x48xf32> to vector<32x16xf32>
    %17 = arith.mulf %15, %15 : vector<16x16xf32>
    %cst_8 = arith.constant dense<0.000000e+00> : vector<16xf32>
    %18 = vector.multi_reduction <add>, %17, %cst_8 [1] : vector<16x16xf32> to vector<16xf32>
    %19 = vector.shape_cast %18 : vector<16xf32> to vector<16x1xf32>
    %20 = math.sqrt %19 : vector<16x1xf32>
    %cst_9 = arith.constant 9.99999996E-13 : f32
    %21 = vector.broadcast %cst_9 : f32 to vector<16x1xf32>
    %22 = arith.maximumf %20, %21 : vector<16x1xf32>
    %23 = vector.broadcast %22 : vector<16x1xf32> to vector<16x16xf32>
    %24 = arith.divf %15, %23 : vector<16x16xf32>
    %25 = arith.mulf %16, %16 : vector<32x16xf32>
    %cst_10 = arith.constant dense<0.000000e+00> : vector<32xf32>
    %26 = vector.multi_reduction <add>, %25, %cst_10 [1] : vector<32x16xf32> to vector<32xf32>
    %27 = vector.shape_cast %26 : vector<32xf32> to vector<32x1xf32>
    %28 = math.sqrt %27 : vector<32x1xf32>
    %cst_11 = arith.constant 9.99999996E-13 : f32
    %29 = vector.broadcast %cst_11 : f32 to vector<32x1xf32>
    %30 = arith.maximumf %28, %29 : vector<32x1xf32>
    %31 = vector.broadcast %30 : vector<32x1xf32> to vector<32x16xf32>
    %32 = arith.divf %16, %31 : vector<32x16xf32>
    %33 = vector.shape_cast %24 : vector<16x16xf32> to vector<2x8x16xf32>
    %34 = vector.shape_cast %32 : vector<32x16xf32> to vector<2x16x16xf32>
    %35 = vector.extract_strided_slice %13 {offsets = [0, 16], sizes = [16, 16], strides = [1, 1]} : vector<16x48xf32> to vector<16x16xf32>
    %36 = vector.extract_strided_slice %14 {offsets = [0, 16], sizes = [32, 16], strides = [1, 1]} : vector<32x48xf32> to vector<32x16xf32>
    %37 = arith.mulf %35, %35 : vector<16x16xf32>
    %cst_12 = arith.constant dense<0.000000e+00> : vector<16xf32>
    %38 = vector.multi_reduction <add>, %37, %cst_12 [1] : vector<16x16xf32> to vector<16xf32>
    %39 = vector.shape_cast %38 : vector<16xf32> to vector<16x1xf32>
    %40 = math.sqrt %39 : vector<16x1xf32>
    %cst_13 = arith.constant 9.99999996E-13 : f32
    %41 = vector.broadcast %cst_13 : f32 to vector<16x1xf32>
    %42 = arith.maximumf %40, %41 : vector<16x1xf32>
    %43 = vector.broadcast %42 : vector<16x1xf32> to vector<16x16xf32>
    %44 = arith.divf %35, %43 : vector<16x16xf32>
    %45 = arith.mulf %36, %36 : vector<32x16xf32>
    %cst_14 = arith.constant dense<0.000000e+00> : vector<32xf32>
    %46 = vector.multi_reduction <add>, %45, %cst_14 [1] : vector<32x16xf32> to vector<32xf32>
    %47 = vector.shape_cast %46 : vector<32xf32> to vector<32x1xf32>
    %48 = math.sqrt %47 : vector<32x1xf32>
    %cst_15 = arith.constant 9.99999996E-13 : f32
    %49 = vector.broadcast %cst_15 : f32 to vector<32x1xf32>
    %50 = arith.maximumf %48, %49 : vector<32x1xf32>
    %51 = vector.broadcast %50 : vector<32x1xf32> to vector<32x16xf32>
    %52 = arith.divf %36, %51 : vector<32x16xf32>
    %53 = vector.shape_cast %44 : vector<16x16xf32> to vector<2x8x16xf32>
    %54 = vector.shape_cast %52 : vector<32x16xf32> to vector<2x16x16xf32>
    %55 = vector.extract_strided_slice %13 {offsets = [0, 32], sizes = [16, 16], strides = [1, 1]} : vector<16x48xf32> to vector<16x16xf32>
    %56 = vector.extract_strided_slice %14 {offsets = [0, 32], sizes = [32, 16], strides = [1, 1]} : vector<32x48xf32> to vector<32x16xf32>
    %57 = arith.mulf %55, %55 : vector<16x16xf32>
    %cst_16 = arith.constant dense<0.000000e+00> : vector<16xf32>
    %58 = vector.multi_reduction <add>, %57, %cst_16 [1] : vector<16x16xf32> to vector<16xf32>
    %59 = vector.shape_cast %58 : vector<16xf32> to vector<16x1xf32>
    %60 = math.sqrt %59 : vector<16x1xf32>
    %cst_17 = arith.constant 9.99999996E-13 : f32
    %61 = vector.broadcast %cst_17 : f32 to vector<16x1xf32>
    %62 = arith.maximumf %60, %61 : vector<16x1xf32>
    %63 = vector.broadcast %62 : vector<16x1xf32> to vector<16x16xf32>
    %64 = arith.divf %55, %63 : vector<16x16xf32>
    %65 = arith.mulf %56, %56 : vector<32x16xf32>
    %cst_18 = arith.constant dense<0.000000e+00> : vector<32xf32>
    %66 = vector.multi_reduction <add>, %65, %cst_18 [1] : vector<32x16xf32> to vector<32xf32>
    %67 = vector.shape_cast %66 : vector<32xf32> to vector<32x1xf32>
    %68 = math.sqrt %67 : vector<32x1xf32>
    %cst_19 = arith.constant 9.99999996E-13 : f32
    %69 = vector.broadcast %cst_19 : f32 to vector<32x1xf32>
    %70 = arith.maximumf %68, %69 : vector<32x1xf32>
    %71 = vector.broadcast %70 : vector<32x1xf32> to vector<32x16xf32>
    %72 = arith.divf %56, %71 : vector<32x16xf32>
    %73 = vector.shape_cast %64 : vector<16x16xf32> to vector<2x8x16xf32>
    %74 = vector.shape_cast %72 : vector<32x16xf32> to vector<2x16x16xf32>
    %75 = tpu.concatenate %34, %54, %74 in 1 : vector<2x16x16xf32>, vector<2x16x16xf32>, vector<2x16x16xf32> -> vector<2x48x16xf32>
    "tpu.trace_start"() <{level = 10 : i32, message = "bqf,bdf->bqd"}> : () -> ()
    %cst_20 = arith.constant dense<0.000000e+00> : vector<2x8x48xf32>
    %76 = tpu.matmul %33, %75, %cst_20 {dimension_numbers = #tpu.dot_dimension_numbers<[2], [2], [1], [1], [0, 0, 0, 1, 1, 1], [0], [0]>} : vector<2x8x16xf32>, vector<2x48x16xf32>, vector<2x8x48xf32> -> vector<2x8x48xf32>
    %cst_21 = arith.constant dense<0.000000e+00> : vector<2x8x48xf32>
    %77 = tpu.matmul %53, %75, %cst_21 {dimension_numbers = #tpu.dot_dimension_numbers<[2], [2], [1], [1], [0, 0, 0, 1, 1, 1], [0], [0]>} : vector<2x8x16xf32>, vector<2x48x16xf32>, vector<2x8x48xf32> -> vector<2x8x48xf32>
    %cst_22 = arith.constant dense<0.000000e+00> : vector<2x8x48xf32>
    %78 = tpu.matmul %73, %75, %cst_22 {dimension_numbers = #tpu.dot_dimension_numbers<[2], [2], [1], [1], [0, 0, 0, 1, 1, 1], [0], [0]>} : vector<2x8x16xf32>, vector<2x48x16xf32>, vector<2x8x48xf32> -> vector<2x8x48xf32>
    "tpu.trace_stop"() : () -> ()
    %79 = tpu.concatenate %76, %77, %78 in 2 : vector<2x8x48xf32>, vector<2x8x48xf32>, vector<2x8x48xf32> -> vector<2x8x144xf32>
    %80 = vector.shape_cast %79 : vector<2x8x144xf32> to vector<16x144xf32>
    %c0_23 = arith.constant 0 : index
    %c0_24 = arith.constant 0 : index
    %81 = vector.load %arg5[%c0_23, %c0_24] : memref<144x9xf32, #tpu.memory_space<vmem>>, vector<144x9xf32>
    %cst_25 = arith.constant dense<0.000000e+00> : vector<16x9xf32>
    %82 = tpu.matmul %80, %81, %cst_25 {dimension_numbers = #tpu.dot_dimension_numbers<[1], [0], [0], [1], [0, 0, 1, 1], [], []>} : vector<16x144xf32>, vector<144x9xf32>, vector<16x9xf32> -> vector<16x9xf32>
    %cst_26 = arith.constant 0.000000e+00 : f32
    %83 = vector.broadcast %cst_26 : f32 to vector<16x9xf32>
    %84 = arith.cmpf one, %82, %83 : vector<16x9xf32>
    %85 = arith.extui %84 : vector<16x9xi1> to vector<16x9xi32>
    %86 = arith.sitofp %85 : vector<16x9xi32> to vector<16x9xf32>
    %c0_27 = arith.constant 0 : index
    %c0_28 = arith.constant 0 : index
    %87 = vector.load %arg6[%c0_27, %c0_28] : memref<9x54xf32, #tpu.memory_space<vmem>>, vector<9x54xf32>
    %cst_29 = arith.constant dense<0.000000e+00> : vector<16x54xf32>
    %88 = tpu.matmul %86, %87, %cst_29 {dimension_numbers = #tpu.dot_dimension_numbers<[1], [0], [0], [1], [0, 0, 1, 1], [], []>} : vector<16x9xf32>, vector<9x54xf32>, vector<16x54xf32> -> vector<16x54xf32>
    %c0_30 = arith.constant 0 : index
    %c0_31 = arith.constant 0 : index
    %89 = vector.load %arg7[%c0_30, %c0_31] : memref<2x864xf32, #tpu.memory_space<vmem>>, vector<1x864xf32>
    %90 = vector.shape_cast %89 : vector<1x864xf32> to vector<1x1x864xf32>
    %c1 = arith.constant 1 : index
    %c0_32 = arith.constant 0 : index
    %91 = vector.load %arg7[%c1, %c0_32] : memref<2x864xf32, #tpu.memory_space<vmem>>, vector<1x864xf32>
    %92 = vector.shape_cast %91 : vector<1x864xf32> to vector<1x1x864xf32>
    %93 = tpu.concatenate %79, %79, %79, %79, %79, %79 in 2 : vector<2x8x144xf32>, vector<2x8x144xf32>, vector<2x8x144xf32>, vector<2x8x144xf32>, vector<2x8x144xf32>, vector<2x8x144xf32> -> vector<2x8x864xf32>
    %94 = vector.broadcast %90 : vector<1x1x864xf32> to vector<2x8x864xf32>
    %95 = arith.subf %93, %94 : vector<2x8x864xf32>
    %96 = arith.mulf %95, %95 : vector<2x8x864xf32>
    %97 = vector.broadcast %92 : vector<1x1x864xf32> to vector<2x8x864xf32>
    %98 = arith.mulf %96, %97 : vector<2x8x864xf32>
    %99 = math.exp %98 : vector<2x8x864xf32>
    %100 = vector.shape_cast %99 : vector<2x8x864xf32> to vector<16x864xf32>
    %c0_33 = arith.constant 0 : index
    %c0_34 = arith.constant 0 : index
    %101 = vector.load %arg4[%c0_33, %c0_34] : memref<864x54xf32, #tpu.memory_space<vmem>>, vector<864x54xf32>
    %cst_35 = arith.constant dense<0.000000e+00> : vector<16x54xf32>
    %102 = tpu.matmul %100, %101, %cst_35 {dimension_numbers = #tpu.dot_dimension_numbers<[1], [0], [0], [1], [0, 0, 1, 1], [], []>} : vector<16x864xf32>, vector<864x54xf32>, vector<16x54xf32> -> vector<16x54xf32>
    %103 = vector.shape_cast %102 : vector<16x54xf32> to vector<2x8x54xf32>
    %104 = arith.mulf %102, %88 : vector<16x54xf32>
    %105 = vector.shape_cast %104 : vector<16x54xf32> to vector<2x8x54xf32>
    %cst_36 = arith.constant dense<0xFF800000> : vector<2x54xf32>
    %106 = vector.multi_reduction <maximumf>, %103, %cst_36 [1] : vector<2x8x54xf32> to vector<2x54xf32>
    %cst_37 = arith.constant 9.99999996E-13 : f32
    %107 = vector.broadcast %cst_37 : f32 to vector<2x54xf32>
    %108 = arith.addf %106, %107 : vector<2x54xf32>
    %cst_38 = arith.constant dense<0.000000e+00> : vector<2x54xf32>
    %109 = vector.multi_reduction <add>, %105, %cst_38 [1] : vector<2x8x54xf32> to vector<2x54xf32>
    %cst_39 = arith.constant 5.000000e-01 : f32
    %110 = vector.broadcast %cst_39 : f32 to vector<2x54xf32>
    %111 = arith.mulf %110, %109 : vector<2x54xf32>
    %112 = arith.divf %111, %108 : vector<2x54xf32>
    %c0_40 = arith.constant 0 : index
    %c0_41 = arith.constant 0 : index
    %113 = vector.load %arg8[%c0_40, %c0_41] : memref<1x54xf32, #tpu.memory_space<vmem>>, vector<1x54xf32>
    %cst_42 = arith.constant dense<0.000000e+00> : vector<1x2xf32>
    %114 = tpu.matmul %113, %112, %cst_42 {dimension_numbers = #tpu.dot_dimension_numbers<[1], [1], [0], [0], [0, 0, 1, 0], [], []>} : vector<1x54xf32>, vector<2x54xf32>, vector<1x2xf32> -> vector<1x2xf32>
    %c0_43 = arith.constant 0 : index
    %115 = memref.load %arg9[%c0_43] : memref<1xf32, #tpu.memory_space<smem>>
    %116 = vector.broadcast %115 : f32 to vector<1x2xf32>
    %117 = arith.addf %114, %116 : vector<1x2xf32>
    %118 = math.tanh %117 : vector<1x2xf32>
    %c0_44 = arith.constant 0 : index
    %c0_45 = arith.constant 0 : index
    %c0_46 = arith.constant 0 : index
    %119 = vector.load %arg10[%c0_44, %c0_45, %c0_46] : memref<1x1x2xf32, #tpu.memory_space<vmem>>, vector<1x1x2xf32>
    %120 = vector.shape_cast %119 : vector<1x1x2xf32> to vector<1x2xf32>
    %121 = vector.shape_cast %118 : vector<1x2xf32> to vector<1x1x2xf32>
    tpu.vector_store %arg10[%c0_44, %c0_45, %c0_46], %121 {strides = array<i32>} : memref<1x1x2xf32, #tpu.memory_space<vmem>>, vector<1x1x2xf32>,
    return
  }
  func.func @transform_0(%arg0: i32) -> (i32, i32, i32) {
    %c0_i32 = arith.constant 0 : i32
    %c0_i32_0 = arith.constant 0 : i32
    %c0_i32_1 = arith.constant 0 : i32
    return %arg0, %c0_i32, %c0_i32_0 : i32, i32, i32
  }
  func.func @transform_1(%arg0: i32) -> (i32, i32, i32) {
    %c0_i32 = arith.constant 0 : i32
    %c0_i32_0 = arith.constant 0 : i32
    %c0_i32_1 = arith.constant 0 : i32
    return %arg0, %c0_i32, %c0_i32_0 : i32, i32, i32
  }
  func.func @transform_2(%arg0: i32) -> (i32, i32) {
    %c0_i32 = arith.constant 0 : i32
    %c0_i32_0 = arith.constant 0 : i32
    %c0_i32_1 = arith.constant 0 : i32
    return %c0_i32, %c0_i32_0 : i32, i32
  }
  func.func @transform_3(%arg0: i32) -> (i32, i32) {
    %c0_i32 = arith.constant 0 : i32
    %c0_i32_0 = arith.constant 0 : i32
    %c0_i32_1 = arith.constant 0 : i32
    return %c0_i32, %c0_i32_0 : i32, i32
  }
  func.func @transform_4(%arg0: i32) -> (i32, i32) {
    %c0_i32 = arith.constant 0 : i32
    %c0_i32_0 = arith.constant 0 : i32
    %c0_i32_1 = arith.constant 0 : i32
    return %c0_i32, %c0_i32_0 : i32, i32
  }
  func.func @transform_5(%arg0: i32) -> (i32, i32) {
    %c0_i32 = arith.constant 0 : i32
    %c0_i32_0 = arith.constant 0 : i32
    %c0_i32_1 = arith.constant 0 : i32
    return %c0_i32, %c0_i32_0 : i32, i32
  }
  func.func @transform_6(%arg0: i32) -> (i32, i32) {
    %c0_i32 = arith.constant 0 : i32
    %c0_i32_0 = arith.constant 0 : i32
    %c0_i32_1 = arith.constant 0 : i32
    return %c0_i32, %c0_i32_0 : i32, i32
  }
  func.func @transform_7(%arg0: i32) -> (i32, i32) {
    %c0_i32 = arith.constant 0 : i32
    %c0_i32_0 = arith.constant 0 : i32
    %c0_i32_1 = arith.constant 0 : i32
    return %c0_i32, %c0_i32_0 : i32, i32
  }
  func.func @transform_8(%arg0: i32) -> i32 {
    %c0_i32 = arith.constant 0 : i32
    %c0_i32_0 = arith.constant 0 : i32
    return %c0_i32 : i32
  }
  func.func @transform_9(%arg0: i32) -> (i32, i32, i32) {
    %c0_i32 = arith.constant 0 : i32
    %c0_i32_0 = arith.constant 0 : i32
    %c0_i32_1 = arith.constant 0 : i32
    return %arg0, %c0_i32, %c0_i32_0 : i32, i32, i32
  }
}

</mosaic_0001>

<bundles_post_ra>
// kernel: conv_knrm_forward.1
= control target key start
LH: loop header
LB: loop body
LE: loop exit
PB: predicated region body
PF: predicated region fallthrough
CT: control target
= control target key end

     0   :  { %vm61_vm0 = vcmask 1045504   ;;  %vm48_vm1 = vcmask 1046528   ;;  %s2989_s21 = smov 64   ;;  %s2990_s22 = smov 32   ;;  %s3952_s0 = inlined_call_operand.vmem [shape: f32[2,10,32], index: 0, kind: input, shape index: {}]   ;;  %s3953_s1 = inlined_call_operand.vmem [shape: f32[2,18,32], index: 1, kind: input, shape index: {}]   ;;  %s3954_s2 = inlined_call_operand.vmem [shape: f32[96,48], index: 2, kind: input, shape index: {}]   ;;  %s3955_s3 = inlined_call_operand.vmem [shape: f32[864,54], index: 3, kind: input, shape index: {}]   ;;  %s3956_s4 = inlined_call_operand.vmem [shape: f32[144,9], index: 4, kind: input, shape index: {}]   ;;  %s3957_s5 = inlined_call_operand.vmem [shape: f32[9,54], index: 5, kind: input, shape index: {}]   ;;  %s3958_s6 = inlined_call_operand.vmem [shape: f32[2,864], index: 6, kind: input, shape index: {}]   ;;  %s3959_s7 = inlined_call_operand.vmem [shape: f32[1,54], index: 7, kind: input, shape index: {}]   ;;  %s3960_s8 = inlined_call_operand.<no memory space> [shape: f32[1], index: 8, kind: input, shape index: {}]   ;;  %s3961_s9 = inlined_call_operand.hbm [shape: f32[1,1,2], index: 9, kind: output, shape index: {}]  }
   0x1   :  { %v3054_v0 = vld [vmem:[%s3953_s1] sm:$0xff]  ;;  %v3059_v1 = vld [vmem:[%s3953_s1 + $0x8] sm:$0xff]  ;;  %v40_v6 = vld [vmem:[%s3953_s1 + $0x10] sm:$0x3] }
   0x2   :  { %v108_v2 = vrot.slane %v3054_v0, 2  ;;  %v109_v3 = vrot.slane %v3059_v1, 2  ;;  %v86_v4 = vrot.slane %v3054_v0, 1  ;;  %v87_v5 = vrot.slane %v3059_v1, 1  ;;  %v3071_v9 = vld [vmem:[%s3953_s1 + $0x20] sm:$0xff]  ;;  %v3079_v11 = vld [vmem:[%s3953_s1 + $0x18] sm:$0xff] }
   0x3   :  { %v111_v7 = vrot.slane %v40_v6, 2  ;;  %v89_v8 = vrot.slane %v40_v6, 1  ;;  %v43_v10 = vld [vmem:[%s3953_s1 + $0x28] sm:$0x3]  ;;  %v92_v14 = vrot.slane %v3071_v9, 1  ;;  %v91_v18 = vrot.slane %v3079_v11, 1 }
   0x4   :  { %v110_v12 = vsel %vm61_vm0, %v108_v2, %v109_v3  ;;  %v88_v13 = vsel %vm48_vm1, %v86_v4, %v87_v5  ;;  %v94_v15 = vrot.slane %v43_v10, 1  ;;  %v138_v19 = vld [vmem:[%s3954_s2] sm:$0xff]  ;;  %v139_v20 = vld [vmem:[%s3954_s2 + $0x8] sm:$0xff]  ;;  %v140_v21 = vld [vmem:[%s3954_s2 + $0x10] sm:$0xff]  ;;  %v114_v24 = vrot.slane %v3071_v9, 2 }
   0x5   :  { %118 = vrot.lane.b32.xlu1 %v110_v12, %s2989_s21  ;;  %96 = vrot.lane.b32.xlu0 %v88_v13, %s2990_s22  ;;  %v112_v16 = vsel %vm61_vm0, %v109_v3, %v111_v7  ;;  %v90_v17 = vsel %vm48_vm1, %v87_v5, %v89_v8  ;;  %v141_v22 = vld [vmem:[%s3954_s2 + $0x18] sm:$0xff]  ;;  %v3108_v25 = vld [vmem:[%s3952_s0 + $0x10] sm:$0xff]  ;;  %v93_v26 = vsel %vm48_vm1, %v91_v18, %v92_v14  ;;  %v116_v27 = vrot.slane %v43_v10, 2 }
   0x6   :  { %v95_v23 = vsel %vm48_vm1, %v92_v14, %v94_v15  ;;  %v113_v28 = vrot.slane %v3079_v11, 2  ;;  %v37_v29 = vld [vmem:[%s3952_s0 + $0x18] sm:$0x3]  ;;  %v2554_v30 = vpack.c.bf16 %v139_v20, %v138_v19 }
   0x9   :  { %120 = vrot.lane.b32.xlu1 %v112_v16, %s2989_s21  ;;  %98 = vrot.lane.b32.xlu0 %v90_v17, %s2990_s22 }
   0xa   :  { %15 = vsyncpa [#allocation4], 0  ;;  %v3118_v31 = vld [vmem:[%s3952_s0] sm:$0xff]  ;;  %v35_v32 = vld [vmem:[%s3952_s0 + $0x8] sm:$0x3]  ;;  %v2558_v33 = vpack.c.bf16 %v141_v22, %v140_v21  ;;  %2579 = vmatprep.subr.bf16.mxu1 %v2554_v30  ;;  %2555 = vmatprep.subr.bf16.mxu0 %v2554_v30  ;;  %v52_v36 = vrot.slane %v3108_v25, 1  ;;  %v117_v38 = vsel %vm61_vm0, %v114_v24, %v116_v27  ;;  %v115_v39 = vsel %vm61_vm0, %v113_v28, %v114_v24 }
   0xb   :  { %v142_v34 = vld [vmem:[%s3954_s2 + $0x20] sm:$0xff]  ;;  %v143_v35 = vld [vmem:[%s3954_s2 + $0x28] sm:$0xff]  ;;  %v53_v37 = vrot.slane %v37_v29, 1  ;;  %v49_v40 = vrot.slane %v3118_v31, 1  ;;  %v50_v41 = vrot.slane %v35_v32, 1  ;;  %2581 = vmatpush3.bf16.msra.mxu1 %v2554_v30  ;;  %2557 = vmatpush3.bf16.msra.mxu0 %v2554_v30  ;;  %v144_v43 = vld [vmem:[%s3954_s2 + $0x30] sm:$0xff] }
   0xc   :  { %2583 = vmatprep.subr.bf16.mxu1 %v2558_v33  ;;  %v2562_v42 = vpack.c.bf16 %v143_v35, %v142_v34  ;;  %2559 = vmatprep.subr.bf16.mxu0 %v2558_v33  ;;  %v145_v44 = vld [vmem:[%s3954_s2 + $0x38] sm:$0xff]  ;;  %v65_v45 = vrot.slane %v3108_v25, 2  ;;  %v66_v46 = vrot.slane %v37_v29, 2  ;;  %v62_v49 = vrot.slane %v3118_v31, 2  ;;  %v146_v52 = vld [vmem:[%s3954_s2 + $0x40] sm:$0xff]  ;;  %v147_v53 = vld [vmem:[%s3954_s2 + $0x48] sm:$0xff] }
   0xd   :  { %102 = vrot.lane.b32.xlu1 %v95_v23, %s2990_s22  ;;  %100 = vrot.lane.b32.xlu0 %v93_v26, %s2990_s22  ;;  %v54_v47 = vsel %vm48_vm1, %v52_v36, %v53_v37  ;;  %v51_v48 = vsel %vm48_vm1, %v49_v40, %v50_v41  ;;  %v63_v50 = vrot.slane %v35_v32, 2  ;;  %v2566_v51 = vpack.c.bf16 %v145_v44, %v144_v43  ;;  %v148_v57 = vld [vmem:[%s3954_s2 + $0x50] sm:$0xff]  ;;  %v149_v58 = vld [vmem:[%s3954_s2 + $0x58] sm:$0xff]  ;;  %s2991_s2 = smov 112   ;;  %s2992_s12 = smov 96  }
   0xe   :  { %v67_v54 = vsel %vm61_vm0, %v65_v45, %v66_v46  ;;  %v2570_v56 = vpack.c.bf16 %v147_v53, %v146_v52  ;;  %v2574_v59 = vpack.c.bf16 %v149_v58, %v148_v57  ;;  %vm74_vm2 = vcmask 261120   ;;  %s2996_s17 = smov 48   ;;  %s2997_s24 = smov 16  }
   0xf   :  { %2585 = vmatpush3.bf16.msra.mxu1 %v2558_v33  ;;  %2561 = vmatpush3.bf16.msra.mxu0 %v2558_v33  ;;  %v64_v55 = vsel %vm61_vm0, %v62_v49, %v63_v50  ;;  %vm77_vm3 = vcmask 523264   ;;  %vm150_vm4 = vcmask 785408   ;;  %vm331_vm5 = vcmask 130048   ;;  %s2998_s28 = smov 80  }
  0x10   :  { %2587 = vmatprep.subr.bf16.mxu1 %v2562_v42  ;;  %2563 = vmatprep.subr.bf16.mxu0 %v2562_v42 }
  0x11   :  { %124 = vrot.lane.b32.xlu1 %v117_v38, %s2989_s21  ;;  %122 = vrot.lane.b32.xlu0 %v115_v39, %s2989_s21 }
  0x13   :  { %2589 = vmatpush3.bf16.msra.mxu1 %v2562_v42  ;;  %2565 = vmatpush3.bf16.msra.mxu0 %v2562_v42 }
  0x14   :  { %2591 = vmatprep.subr.bf16.mxu1 %v2566_v51  ;;  %2567 = vmatprep.subr.bf16.mxu0 %v2566_v51 }
  0x15   :  { %57 = vrot.lane.b32.xlu1 %v54_v47, %s2990_s22  ;;  %55 = vrot.lane.b32.xlu0 %v51_v48, %s2990_s22 }
  0x17   :  { %2593 = vmatpush3.bf16.msra.mxu1 %v2566_v51  ;;  %2569 = vmatpush3.bf16.msra.mxu0 %v2566_v51 }
  0x18   :  { %2595 = vmatprep.subr.bf16.mxu1 %v2570_v56  ;;  %2571 = vmatprep.subr.bf16.mxu0 %v2570_v56 }
  0x19   :  { %70 = vrot.lane.b32.xlu1 %v67_v54, %s2989_s21  ;;  %68 = vrot.lane.b32.xlu0 %v64_v55, %s2989_s21 }
  0x1b   :  { %2597 = vmatpush3.bf16.msra.mxu1 %v2570_v56  ;;  %2573 = vmatpush3.bf16.msra.mxu0 %v2570_v56  ;;  %v2993_v56 = vmov 0.0|0.0  }
  0x1c   :  { %2599 = vmatprep.subr.bf16.mxu1 %v2574_v59  ;;  %2575 = vmatprep.subr.bf16.mxu0 %v2574_v59 }
  0x1f   :  { %2601 = vmatpush3.bf16.msra.mxu1 %v2574_v59  ;;  %2577 = vmatpush3.bf16.msra.mxu0 %v2574_v59 }
  0x20   :  { %2602 = vmatprep.subr.bf16.mxu0 %v2993_v56  ;;  %2614 = vmatprep.subr.bf16.mxu1 %v2993_v56 }
  0x77   :  { %v119_v60 = vpop.permute.xlu1 %118  ;;  %v97_v61 = vpop.permute.xlu0 %96 }
  0x78   :  { %v130_v62 = vsel %vm74_vm2, %v3054_v0, %v97_v61 }
  0x79   :  { %v134_v63 = vsel %vm77_vm3, %v130_v62, %v119_v60 }
  0x7a   :  { %2419 = vmatprep.mubr.msk.f32.mxu1 %vm150_vm4, %v134_v63 }
  0x7b   :  { %v121_v2 = vpop.permute.xlu1 %120  ;;  %v99_v3 = vpop.permute.xlu0 %98 }
  0x7c   :  { %v131_v4 = vsel %vm74_vm2, %v3059_v1, %v99_v3 }
  0x7d   :  { %v135_v5 = vsel %vm77_vm3, %v131_v4, %v121_v2 }
  0x7e   :  { %2420 = vmatmul.mubr.msk.f32.vlgmr.msra.gmra.mrb[0].mxu1 %vm150_vm4, %v135_v5 }
  0x7f   :  { %v103_v6 = vpop.permute.xlu1 %102  ;;  %v101_v7 = vpop.permute.xlu0 %100 }
  0x80   :  { %v133_v8 = vsel %vm74_vm2, %v3071_v9, %v103_v6  ;;  %v132_v0 = vsel %vm74_vm2, %v3079_v11, %v101_v7 }
  0x83   :  { %v125_v10 = vpop.permute.xlu1 %124  ;;  %v123_v12 = vpop.permute.xlu0 %122 }
  0x84   :  { %v137_v13 = vsel %vm77_vm3, %v133_v8, %v125_v10  ;;  %v136_v14 = vsel %vm77_vm3, %v132_v0, %v123_v12 }
  0x85   :  { %2422 = vmatprep.mubr.msk.f32.mxu1 %vm150_vm4, %v136_v14 }
  0x86   :  { %2423 = vmatmul.mubr.msk.f32.gmra.mrb[2].mxu1 %vm150_vm4, %v137_v13 }
  0x87   :  { %v58_v1 = vpop.permute.xlu1 %57  ;;  %v56_v15 = vpop.permute.xlu0 %55 }
  0x88   :  { %v76_v16 = vsel %vm74_vm2, %v3108_v25, %v58_v1  ;;  %v75_v9 = vsel %vm74_vm2, %v3118_v31, %v56_v15 }
  0x8b   :  { %v71_v17 = vpop.permute.xlu1 %70  ;;  %v69_v11 = vpop.permute.xlu0 %68 }
  0x8c   :  { %v79_v18 = vsel %vm77_vm3, %v76_v16, %v71_v17  ;;  %v78_v19 = vsel %vm77_vm3, %v75_v9, %v69_v11 }
  0x8d   :  { %2392 = vmatprep.mubr.msk.f32.mxu0 %vm150_vm4, %v78_v19 }
  0x8e   :  { %2393 = vmatmul.mubr.msk.f32.vlgmr.msra.gmra.mrb[0].mxu0 %vm150_vm4, %v79_v18 }
 0x151   :  { %v3189_v20 = vpop.f32.mrb[0].mxu1 }
 0x152   :  { %v3191_v21 = vpop.f32.mrb[1].mxu1  ;;  %v359_v22 = vmul.f32 %v3189_v20, %v3189_v20 }
 0x153   :  { %v358_v23 = vmul.f32 %v3191_v21, %v3191_v21 }
 0x154   :  { %454 = vrot.lane.b32.xlu1 %v359_v22, %s2991_s2  ;;  %v365_v54 = vsel %vm331_vm5, %v359_v22, 0.0 }
 0x155   :  { %452 = vrot.lane.b32.xlu0 %v358_v23, %s2991_s2  ;;  %v362_v50 = vsel %vm331_vm5, %v358_v23, 0.0 }
 0x158   :  { %550 = vrot.lane.b32.xlu1 %v359_v22, %s2992_s12 }
 0x159   :  { %v3200_v24 = vpop.f32.mrb[2].mxu1  ;;  %548 = vrot.lane.b32.xlu0 %v358_v23, %s2992_s12 }
 0x15a   :  { %v3203_v25 = vpop.f32.mrb[3].mxu1  ;;  %v361_v30 = vmul.f32 %v3200_v24, %v3200_v24 }
 0x15b   :  { %v360_v31 = vmul.f32 %v3203_v25, %v3203_v25 }
 0x15c   :  { %v371_v55 = vsel %vm331_vm5, %v361_v30, 0.0 }
 0x15d   :  { %v368_v51 = vsel %vm331_vm5, %v360_v31, 0.0 }
 0x161   :  { %v3205_v26 = vpop.f32.mrb[0].mxu0 }
 0x162   :  { %v3207_v27 = vpop.f32.mrb[1].mxu0  ;;  %v3211_v28 = vmul.f32 %v3205_v26, %v3205_v26 }
 0x163   :  { %v329_v29 = vmul.f32 %v3207_v27, %v3207_v27 }
 0x164   :  { %418 = vrot.lane.b32.xlu1 %v3211_v28, %s2991_s2 }
 0x165   :  { %416 = vrot.lane.b32.xlu0 %v329_v29, %s2991_s2  ;;  %v332_v62 = vsel %vm331_vm5, %v329_v29, 0.0 }
 0x168   :  { %458 = vrot.lane.b32.xlu1 %v361_v30, %s2991_s2 }
 0x169   :  { %456 = vrot.lane.b32.xlu0 %v360_v31, %s2991_s2 }
 0x16c   :  { %554 = vrot.lane.b32.xlu1 %v361_v30, %s2992_s12 }
 0x16d   :  { %552 = vrot.lane.b32.xlu0 %v360_v31, %s2992_s12 }
 0x1c6   :  { %v455_v32 = vpop.permute.xlu1 %454 }
 0x1c7   :  { %v467_v33 = vsel %vm331_vm5, %v455_v32, 0.0  ;;  %v453_v34 = vpop.permute.xlu0 %452 }
 0x1c8   :  { %468 = vadd.xlane.f32.xlu1 %v467_v33  ;;  %v464_v37 = vsel %vm331_vm5, %v453_v34, 0.0 }
 0x1ca   :  { %v551_v35 = vpop.permute.xlu1 %550 }
 0x1cb   :  { %v563_v36 = vsel %vm331_vm5, %v551_v35, 0.0  ;;  %v549_v38 = vpop.permute.xlu0 %548 }
 0x1cc   :  { %564 = vadd.xlane.f32.xlu0 %v563_v36  ;;  %v560_v39 = vsel %vm331_vm5, %v549_v38, 0.0  ;;  %v335_v38 = vsel %vm331_vm5, %v3211_v28, 0.0 }
 0x1d0   :  { %465 = vadd.xlane.f32.xlu0 %v464_v37 }
 0x1d4   :  { %561 = vadd.xlane.f32.xlu0 %v560_v39 }
 0x1d6   :  { %v419_v40 = vpop.permute.xlu1 %418 }
 0x1d7   :  { %v417_v41 = vpop.permute.xlu0 %416  ;;  %v425_v49 = vsel %vm331_vm5, %v419_v40, 0.0 }
 0x1d8   :  { %v422_v48 = vsel %vm331_vm5, %v417_v41, 0.0 }
 0x1d9   :  { %516 = vrot.lane.b32.xlu1 %v329_v29, %s2992_s12 }
 0x1da   :  { %v459_v42 = vpop.permute.xlu1 %458 }
 0x1db   :  { %v473_v43 = vsel %vm331_vm5, %v459_v42, 0.0  ;;  %v457_v44 = vpop.permute.xlu0 %456 }
 0x1dc   :  { %474 = vadd.xlane.f32.xlu0 %v473_v43  ;;  %v470_v45 = vsel %vm331_vm5, %v457_v44, 0.0 }
 0x1de   :  { %v555_v52 = vpop.permute.xlu1 %554 }
 0x1df   :  { %v553_v46 = vpop.permute.xlu0 %552  ;;  %v569_v53 = vsel %vm331_vm5, %v555_v52, 0.0 }
 0x1e0   :  { %471 = vadd.xlane.f32.xlu0 %v470_v45  ;;  %v566_v47 = vsel %vm331_vm5, %v553_v46, 0.0 }
 0x1f6   :  { %518 = vrot.lane.b32.xlu0 %v3211_v28, %s2992_s12 }
 0x1fd   :  { %567 = vadd.xlane.f32.xlu1 %v566_v47 }
 0x201   :  { %423 = vadd.xlane.f32.xlu1 %v422_v48 }
 0x205   :  { %426 = vadd.xlane.f32.xlu1 %v425_v49 }
 0x209   :  { %363 = vadd.xlane.f32.xlu1 %v362_v50 }
 0x20d   :  { %369 = vadd.xlane.f32.xlu1 %v368_v51 }
 0x215   :  { %570 = vadd.xlane.f32.xlu0 %v569_v53 }
 0x219   :  { %366 = vadd.xlane.f32.xlu0 %v365_v54 }
 0x21d   :  { %372 = vadd.xlane.f32.xlu0 %v371_v55 }
 0x255   :  { %v469_v57 = vpop.xlane.xlu1 %468 }
 0x256   :  { %2859 = vrsqrt.f32 %v469_v57  ;;  %vm485_vm6 = vcmp.eq.f32.partialorder %v469_v57, inf  ;;  %v488_v6 = vand.u32 2147483648, %v469_v57  ;;  %vm487_vm7 = vcmp.eq.f32.partialorder %v469_v57, 0.0 }
 0x259   :  { %v517_v58 = vpop.permute.xlu1 %516  ;;  %v565_v59 = vpop.xlane.xlu0 %564 }
 0x25a   :  { %2861 = vrsqrt.f32 %v565_v59  ;;  %v522_v60 = vsel %vm331_vm5, %v517_v58, 0.0  ;;  %vm581_vm8 = vcmp.eq.f32.partialorder %v565_v59, inf  ;;  %v584_v12 = vand.u32 2147483648, %v565_v59 }
 0x25b   :  { %523 = vadd.xlane.f32.xlu1 %v522_v60  ;;  %vm583_vm9 = vcmp.eq.f32.partialorder %v565_v59, 0.0 }
 0x25d   :  { %v466_v61 = vpop.xlane.xlu0 %465 }
 0x25e   :  { %2863 = vrsqrt.f32 %v466_v61  ;;  %vm478_vm10 = vcmp.eq.f32.partialorder %v466_v61, inf  ;;  %v481_v16 = vand.u32 2147483648, %v466_v61  ;;  %vm480_vm11 = vcmp.eq.f32.partialorder %v466_v61, 0.0 }
 0x25f   :  { %333 = vadd.xlane.f32.xlu1 %v332_v62 }
 0x260   :  { %v2860_v63 = vpop.eup %2859 }
 0x261   :  { %v484_v2 = vmul.f32 %v2860_v63, %v469_v57  ;;  %v562_v3 = vpop.xlane.xlu0 %561  ;;  %v2995_v63 = vmov 0.0  }
 0x262   :  { %2865 = vrsqrt.f32 %v562_v3  ;;  %vm574_vm12 = vcmp.eq.f32.partialorder %v562_v3, inf  ;;  %v577_v29 = vand.u32 2147483648, %v562_v3  ;;  %vm576_vm13 = vcmp.eq.f32.partialorder %v562_v3, 0.0 }
 0x263   :  { %v486_v4 = vsel %vm485_vm6, %v469_v57, %v484_v2  ;;  %vm2994_vm6 = vmmov 0  }
 0x264   :  { %v2862_v5 = vpop.eup %2861  ;;  %v489_v8 = vsel %vm487_vm7, %v488_v6, %v486_v4  ;;  %2437 = vmatprep.mubr.msk.f32.mxu0 %vm2994_vm6, %v2995_v63  ;;  %2452 = vmatprep.mubr.msk.f32.mxu1 %vm2994_vm6, %v2995_v63 }
 0x265   :  { %v580_v7 = vmul.f32 %v2862_v5, %v565_v59  ;;  %v505_v13 = vmax.f32 %v489_v8, 1e-12 }
 0x267   :  { %v582_v0 = vsel %vm581_vm8, %v565_v59, %v580_v7 }
 0x268   :  { %v2864_v10 = vpop.eup %2863  ;;  %v585_v15 = vsel %vm583_vm9, %v584_v12, %v582_v0 }
 0x269   :  { %v477_v14 = vmul.f32 %v2864_v10, %v466_v61  ;;  %v475_v1 = vpop.xlane.xlu0 %474  ;;  %v601_v18 = vmax.f32 %v585_v15, 1e-12 }
 0x26a   :  { %2867 = vrsqrt.f32 %v475_v1  ;;  %vm499_vm14 = vcmp.eq.f32.partialorder %v475_v1, inf  ;;  %v502_v37 = vand.u32 2147483648, %v475_v1  ;;  %vm501_vm15 = vcmp.eq.f32.partialorder %v475_v1, 0.0 }
 0x26b   :  { %v479_v9 = vsel %vm478_vm10, %v466_v61, %v477_v14  ;;  %2869 = vrcp.f32 %v505_v13 }
 0x26c   :  { %v2866_v17 = vpop.eup %2865  ;;  %v482_v11 = vsel %vm480_vm11, %v481_v16, %v479_v9 }
 0x26d   :  { %v504_v19 = vmax.f32 %v482_v11, 1e-12  ;;  %v573_v22 = vmul.f32 %v2866_v17, %v562_v3  ;;  %v472_v23 = vpop.xlane.xlu0 %471 }
 0x26e   :  { %2871 = vrsqrt.f32 %v472_v23  ;;  %vm492_vm0 = vcmp.eq.f32.partialorder %v472_v23, inf  ;;  %v495_v46 = vand.u32 2147483648, %v472_v23  ;;  %vm494_vm1 = vcmp.eq.f32.partialorder %v472_v23, 0.0 }
 0x26f   :  { %2873 = vrcp.f32 %v504_v19  ;;  %v575_v30 = vsel %vm574_vm12, %v562_v3, %v573_v22 }
 0x270   :  { %v578_v31 = vsel %vm576_vm13, %v577_v29, %v575_v30  ;;  %2875 = vrcp.f32 %v601_v18 }
 0x271   :  { %v600_v32 = vmax.f32 %v578_v31, 1e-12  ;;  %v519_v33 = vpop.permute.xlu0 %518 }
 0x272   :  { %v525_v34 = vsel %vm331_vm5, %v519_v33, 0.0 }
 0x273   :  { %2877 = vrcp.f32 %v600_v32  ;;  %526 = vadd.xlane.f32.xlu0 %v525_v34 }
 0x274   :  { %v2868_v35 = vpop.eup %2867 }
 0x275   :  { %v498_v36 = vmul.f32 %v2868_v35, %v475_v1  ;;  %v2870_v39 = vpop.eup %2869 }
 0x276   :  { %v511_v48 = vmul.f32 %v2870_v39, %v3189_v20 }
 0x277   :  { %v500_v40 = vsel %vm499_vm14, %v475_v1, %v498_v36  ;;  %336 = vadd.xlane.f32.xlu0 %v335_v38 }
 0x278   :  { %v2872_v41 = vpop.eup %2871  ;;  %v503_v42 = vsel %vm501_vm15, %v502_v37, %v500_v40 }
 0x279   :  { %v2874_v43 = vpop.eup %2873  ;;  %v507_v44 = vmax.f32 %v503_v42, 1e-12  ;;  %v491_v45 = vmul.f32 %v2872_v41, %v472_v23 }
 0x27a   :  { %v509_v47 = vmul.f32 %v2874_v43, %v3191_v21  ;;  %v2876_v49 = vpop.eup %2875 }
 0x27b   :  { %v493_v50 = vsel %vm492_vm0, %v472_v23, %v491_v45  ;;  %2879 = vrcp.f32 %v507_v44  ;;  %v607_v55 = vmul.f32 %v2876_v49, %v3189_v20 }
 0x27c   :  { %v496_v51 = vsel %vm494_vm1, %v495_v46, %v493_v50  ;;  %v2839_v28 = vpack.i.bf16 %v511_v48, %v509_v47 }
 0x27d   :  { %v2878_v52 = vpop.eup %2877  ;;  %v506_v53 = vmax.f32 %v496_v51, 1e-12 }
 0x27e   :  { %2840 = vrot.lane.b32.xlu1 %v2839_v28, %s2991_s2  ;;  %v605_v54 = vmul.f32 %v2878_v52, %v3191_v21 }
 0x27f   :  { %2881 = vrcp.f32 %v506_v53 }
 0x280   :  { %v2849_v57 = vpack.i.bf16 %v607_v55, %v605_v54 }
 0x282   :  { %2850 = vrot.lane.b32.xlu1 %v2849_v57, %s2992_s12 }
 0x285   :  { %v2880_v58 = vpop.eup %2879 }
 0x286   :  { %v515_v62 = vmul.f32 %v2880_v58, %v3200_v24 }
 0x289   :  { %v2882_v59 = vpop.eup %2881 }
 0x28a   :  { %v568_v60 = vpop.xlane.xlu1 %567  ;;  %v513_v61 = vmul.f32 %v2882_v59, %v3203_v25 }
 0x28b   :  { %vm588_vm9 = vcmp.eq.f32.partialorder %v568_v60, inf  ;;  %v591_v22 = vand.u32 2147483648, %v568_v60  ;;  %vm590_vm10 = vcmp.eq.f32.partialorder %v568_v60, 0.0 }
 0x28c   :  { %v2844_v2 = vpack.i.bf16 %v515_v62, %v513_v61 }
 0x28e   :  { %v424_v3 = vpop.xlane.xlu1 %423  ;;  %2845 = vrot.lane.b32.xlu0 %v2844_v2, %s2991_s2 }
 0x28f   :  { %2883 = vrsqrt.f32 %v424_v3  ;;  %vm430_vm7 = vcmp.eq.f32.partialorder %v424_v3, inf  ;;  %v433_v8 = vand.u32 2147483648, %v424_v3  ;;  %vm432_vm8 = vcmp.eq.f32.partialorder %v424_v3, 0.0 }
 0x290   :  { %2885 = vrsqrt.f32 %v568_v60 }
 0x292   :  { %v427_v4 = vpop.xlane.xlu1 %426 }
 0x293   :  { %vm437_vm12 = vcmp.eq.f32.partialorder %v427_v4, inf  ;;  %vm439_vm13 = vcmp.eq.f32.partialorder %v427_v4, 0.0  ;;  %v440_v39 = vand.u32 2147483648, %v427_v4 }
 0x296   :  { %v364_v5 = vpop.xlane.xlu1 %363 }
 0x297   :  { %2887 = vrsqrt.f32 %v364_v5  ;;  %vm376_vm11 = vcmp.eq.f32.partialorder %v364_v5, inf  ;;  %v379_v37 = vand.u32 2147483648, %v364_v5  ;;  %vm378_vm14 = vcmp.eq.f32.partialorder %v364_v5, 0.0 }
 0x298   :  { %2889 = vrsqrt.f32 %v427_v4 }
 0x299   :  { %v2884_v6 = vpop.eup %2883 }
 0x29a   :  { %v429_v7 = vmul.f32 %v2884_v6, %v424_v3  ;;  %v370_v10 = vpop.xlane.xlu1 %369  ;;  %v2886_v14 = vpop.eup %2885 }
 0x29b   :  { %2891 = vrsqrt.f32 %v370_v10  ;;  %v587_v15 = vmul.f32 %v2886_v14, %v568_v60  ;;  %vm390_vm15 = vcmp.eq.f32.partialorder %v370_v10, inf  ;;  %v393_v47 = vand.u32 2147483648, %v370_v10 }
 0x29c   :  { %v431_v0 = vsel %vm430_vm7, %v424_v3, %v429_v7  ;;  %vm392_vm7 = vcmp.eq.f32.partialorder %v370_v10, 0.0 }
 0x29d   :  { %v434_v12 = vsel %vm432_vm8, %v433_v8, %v431_v0  ;;  %v589_v11 = vsel %vm588_vm9, %v568_v60, %v587_v15 }
 0x29e   :  { %v442_v13 = vmax.f32 %v434_v12, 1e-12  ;;  %v592_v31 = vsel %vm590_vm10, %v591_v22, %v589_v11 }
 0x29f   :  { %v602_v38 = vmax.f32 %v592_v31, 1e-12 }
 0x2a0   :  { %2893 = vrcp.f32 %v442_v13 }
 0x2a1   :  { %v2888_v16 = vpop.eup %2887 }
 0x2a2   :  { %v571_v1 = vpop.xlane.xlu0 %570  ;;  %v2890_v9 = vpop.eup %2889  ;;  %v375_v18 = vmul.f32 %v2888_v16, %v364_v5 }
 0x2a3   :  { %2895 = vrsqrt.f32 %v571_v1  ;;  %v436_v23 = vmul.f32 %v2890_v9, %v427_v4  ;;  %vm595_vm0 = vcmp.eq.f32.partialorder %v571_v1, inf  ;;  %v598_v42 = vand.u32 2147483648, %v571_v1 }
 0x2a4   :  { %v377_v32 = vsel %vm376_vm11, %v364_v5, %v375_v18  ;;  %vm597_vm1 = vcmp.eq.f32.partialorder %v571_v1, 0.0 }
 0x2a5   :  { %v2892_v19 = vpop.eup %2891  ;;  %v438_v36 = vsel %vm437_vm12, %v427_v4, %v436_v23  ;;  %v380_v41 = vsel %vm378_vm14, %v379_v37, %v377_v32  ;;  %vm3272_vm12 = vmpackc.low %vm331_vm5, %vm331_vm5 }
 0x2a6   :  { %v367_v17 = vpop.xlane.xlu0 %366  ;;  %v389_v33 = vmul.f32 %v2892_v19, %v370_v10  ;;  %v441_v43 = vsel %vm439_vm13, %v440_v39, %v438_v36  ;;  %v402_v49 = vmax.f32 %v380_v41, 1e-12 }
 0x2a7   :  { %2897 = vrsqrt.f32 %v367_v17  ;;  %v443_v28 = vmax.f32 %v441_v43, 1e-12  ;;  %vm383_vm8 = vcmp.eq.f32.partialorder %v367_v17, inf  ;;  %v386_v53 = vand.u32 2147483648, %v367_v17 }
 0x2a8   :  { %v391_v44 = vsel %vm390_vm15, %v370_v10, %v389_v33  ;;  %vm385_vm9 = vcmp.eq.f32.partialorder %v367_v17, 0.0 }
 0x2a9   :  { %v394_v52 = vsel %vm392_vm7, %v393_v47, %v391_v44 }
 0x2aa   :  { %v2894_v29 = vpop.eup %2893  ;;  %v373_v30 = vpop.xlane.xlu0 %372  ;;  %v404_v58 = vmax.f32 %v394_v52, 1e-12 }
 0x2ab   :  { %2899 = vrsqrt.f32 %v373_v30  ;;  %v445_v34 = vmul.f32 %v2894_v29, %v3207_v27  ;;  %vm397_vm10 = vcmp.eq.f32.partialorder %v373_v30, inf  ;;  %v400_v61 = vand.u32 2147483648, %v373_v30 }
 0x2ac   :  { %2901 = vrcp.f32 %v602_v38  ;;  %vm399_vm11 = vcmp.eq.f32.partialorder %v373_v30, 0.0 }
 0x2ad   :  { %v2896_v35 = vpop.eup %2895  ;;  %811 = vrot.lane.b32.xlu0 %v445_v34, %s2991_s2 }
 0x2ae   :  { %v594_v40 = vmul.f32 %v2896_v35, %v571_v1 }
 0x2b0   :  { %v596_v45 = vsel %vm595_vm0, %v571_v1, %v594_v40 }
 0x2b1   :  { %v2898_v46 = vpop.eup %2897  ;;  %v599_v48 = vsel %vm597_vm1, %v598_v42, %v596_v45 }
 0x2b2   :  { %v603_v50 = vmax.f32 %v599_v48, 1e-12  ;;  %v382_v51 = vmul.f32 %v2898_v46, %v367_v17 }
 0x2b4   :  { %2903 = vrcp.f32 %v603_v50  ;;  %v384_v54 = vsel %vm383_vm8, %v367_v17, %v382_v51 }
 0x2b5   :  { %v2900_v55 = vpop.eup %2899  ;;  %v387_v57 = vsel %vm385_vm9, %v386_v53, %v384_v54  ;;  %2905 = vrcp.f32 %v402_v49 }
 0x2b6   :  { %v403_v59 = vmax.f32 %v387_v57, 1e-12  ;;  %v396_v60 = vmul.f32 %v2900_v55, %v373_v30  ;;  %2907 = vrcp.f32 %v443_v28  ;;  %v2902_v4 = vpop.eup %2901 }
 0x2b7   :  { %v609_v6 = vmul.f32 %v2902_v4, %v3203_v25 }
 0x2b8   :  { %2909 = vrcp.f32 %v403_v59  ;;  %v398_v62 = vsel %vm397_vm10, %v373_v30, %v396_v60  ;;  %vm1126_vm10 = vcmask 392192  }
 0x2b9   :  { %v401_v2 = vsel %vm399_vm11, %v400_v61, %v398_v62  ;;  %2911 = vrcp.f32 %v404_v58  ;;  %vm1243_vm11 = vcmask 1040384  }
 0x2ba   :  { %v405_v3 = vmax.f32 %v401_v2, 1e-12 }
 0x2bc   :  { %2913 = vrcp.f32 %v405_v3 }
 0x2be   :  { %v2904_v5 = vpop.eup %2903 }
 0x2bf   :  { %v611_v7 = vmul.f32 %v2904_v5, %v3200_v24  ;;  %v2906_v8 = vpop.eup %2905 }
 0x2c0   :  { %v2908_v0 = vpop.eup %2907  ;;  %v407_v13 = vmul.f32 %v2906_v8, %v3191_v21 }
 0x2c1   :  { %v2854_v10 = vpack.i.bf16 %v611_v7, %v609_v6  ;;  %v447_v16 = vmul.f32 %v2908_v0, %v3205_v26 }
 0x2c2   :  { %v2910_v12 = vpop.eup %2909 }
 0x2c3   :  { %2855 = vrot.lane.b32.xlu1 %v2854_v10, %s2992_s12  ;;  %v409_v14 = vmul.f32 %v2910_v12, %v3189_v20  ;;  %v2912_v1 = vpop.eup %2911 }
 0x2c4   :  { %v411_v20 = vmul.f32 %v2912_v1, %v3203_v25 }
 0x2c5   :  { %v3277_v9 = vpack.c.bf16 %v409_v14, %v407_v13 }
 0x2c6   :  { %v2914_v17 = vpop.eup %2913 }
 0x2c7   :  { %886 = vrot.lane.b32.xlu1 %v447_v16, %s2991_s2  ;;  %2605 = vmatpush3.bf16.xpose.msk.msra.mxu0 %vm3272_vm12, %v3277_v9  ;;  %v413_v21 = vmul.f32 %v2914_v17, %v3200_v24 }
 0x2c8   :  { %2606 = vmatprep.subr.bf16.mxu0 %v2993_v56 }
 0x2c9   :  { %v3286_v11 = vpack.c.bf16 %v413_v21, %v411_v20  ;;  %v1131_v20 = vld [vmem:[%s3956_s4] sm:$0xff]  ;;  %v1132_v21 = vld [vmem:[%s3956_s4 + $0x8] sm:$0xff] }
 0x2cb   :  { %2617 = vmatpush3.bf16.xpose.msk.msra.mxu1 %vm3272_vm12, %v3286_v11 }
 0x2cc   :  { %2618 = vmatprep.subr.bf16.mxu1 %v2993_v56 }
 0x2e8   :  { %v524_v18 = vpop.xlane.xlu1 %523 }
 0x2e9   :  { %2915 = vrsqrt.f32 %v524_v18  ;;  %vm530_vm13 = vcmp.eq.f32.partialorder %v524_v18, inf  ;;  %v533_v32 = vand.u32 2147483648, %v524_v18  ;;  %vm532_vm14 = vcmp.eq.f32.partialorder %v524_v18, 0.0 }
 0x2ec   :  { %v334_v19 = vpop.xlane.xlu1 %333 }
 0x2ed   :  { %2917 = vrsqrt.f32 %v334_v19  ;;  %vm340_vm15 = vcmp.eq.f32.partialorder %v334_v19, inf  ;;  %v343_v40 = vand.u32 2147483648, %v334_v19  ;;  %vm342_vm0 = vcmp.eq.f32.partialorder %v334_v19, 0.0 }
 0x2f0   :  { %v2841_v22 = vpop.permute.xlu1 %2840 }
 0x2f1   :  { %v2843_v23 = vunpack.i.h.bf16 %v2841_v22  ;;  %v2842_v29 = vunpack.i.l.bf16 %v2841_v22 }
 0x2f3   :  { %v2916_v25 = vpop.eup %2915  ;;  %v3292_v30 = vpack.c.bf16 %v2843_v23, %v2842_v29  ;;  %v1133_v23 = vld [vmem:[%s3956_s4 + $0x10] sm:$0xff]  ;;  %v1134_v29 = vld [vmem:[%s3956_s4 + $0x18] sm:$0xff] }
 0x2f4   :  { %v529_v24 = vmul.f32 %v2916_v25, %v524_v18  ;;  %v2851_v31 = vpop.permute.xlu1 %2850  ;;  %v1135_v25 = vld [vmem:[%s3956_s4 + $0x20] sm:$0xff] }
 0x2f5   :  { %2609 = vmatpush3.bf16.xpose.msk.msra.mxu0 %vm3272_vm12, %v3292_v30  ;;  %v2853_v36 = vunpack.i.h.bf16 %v2851_v31  ;;  %v2852_v37 = vunpack.i.l.bf16 %v2851_v31 }
 0x2f6   :  { %v531_v33 = vsel %vm530_vm13, %v524_v18, %v529_v24  ;;  %2610 = vmatprep.subr.bf16.mxu0 %v2993_v56  ;;  %v1136_v24 = vld [vmem:[%s3956_s4 + $0x28] sm:$0xff] }
 0x2f7   :  { %v2918_v34 = vpop.eup %2917  ;;  %v534_v35 = vsel %vm532_vm14, %v533_v32, %v531_v33  ;;  %v2611_v43 = vpack.c.bf16 %v2853_v36, %v2852_v37  ;;  %v2681_v31 = vpack.c.bf16 %v1136_v24, %v1135_v25  ;;  %v1137_v32 = vld [vmem:[%s3956_s4 + $0x30] sm:$0xff]  ;;  %v1138_v33 = vld [vmem:[%s3956_s4 + $0x38] sm:$0xff]  ;;  %v1140_v36 = vld [vmem:[%s3956_s4 + $0x48] sm:$0xff]  ;;  %vm1391_vm14 = vcmask 654336  }
 0x2f8   :  { %v542_v38 = vmax.f32 %v534_v35, 1e-12  ;;  %v339_v39 = vmul.f32 %v2918_v34, %v334_v19  ;;  %v2684_v34 = vpack.c.bf16 %v1138_v33, %v1137_v32  ;;  %v1139_v35 = vld [vmem:[%s3956_s4 + $0x40] sm:$0xff]  ;;  %v1609_v25 = vld [vmem:[%s3955_s3 + $0x1d8] sm:$0xff] }
 0x2f9   :  { %v2687_v37 = vpack.c.bf16 %v1140_v36, %v1139_v35  ;;  %v1593_v32 = vld [vmem:[%s3955_s3 + $0x158] sm:$0xff]  ;;  %v1611_v35 = vld [vmem:[%s3955_s3 + $0x1e8] sm:$0xff] }
 0x2fa   :  { %2919 = vrcp.f32 %v542_v38  ;;  %v341_v41 = vsel %vm340_vm15, %v334_v19, %v339_v39  ;;  %v1141_v39 = vld [vmem:[%s3956_s4 + $0x50] sm:$0xff]  ;;  %vm2086_vm15 = vcmask 8192  }
 0x2fb   :  { %v344_v42 = vsel %vm342_vm0, %v343_v40, %v341_v41  ;;  %v1142_v40 = vld [vmem:[%s3956_s4 + $0x58] sm:$0xff] }
 0x2fc   :  { %v352_v44 = vmax.f32 %v344_v42, 1e-12  ;;  %v2690_v42 = vpack.c.bf16 %v1142_v40, %v1141_v39  ;;  %v1612_v39 = vld [vmem:[%s3955_s3 + $0x1f0] sm:$0xff]  ;;  %v1613_v40 = vld [vmem:[%s3955_s3 + $0x1f8] sm:$0xff] }
 0x2fd   :  { %2613 = vmatpush3.bf16.xpose.msk.msra.mxu0 %vm3272_vm12, %v2611_v43 }
 0x2fe   :  { %2921 = vrcp.f32 %v352_v44  ;;  %2626 = vmatprep.subr.bf16.mxu0 %v2993_v56  ;;  %v1144_v44 = vld [vmem:[%s3956_s4 + $0x68] sm:$0xff] }
 0x300   :  { %v527_v45 = vpop.xlane.xlu0 %526 }
 0x301   :  { %2923 = vrsqrt.f32 %v527_v45  ;;  %vm537_vm1 = vcmp.eq.f32.partialorder %v527_v45, inf  ;;  %v540_v57 = vand.u32 2147483648, %v527_v45  ;;  %vm539_vm7 = vcmp.eq.f32.partialorder %v527_v45, 0.0 }
 0x304   :  { %v337_v46 = vpop.xlane.xlu0 %336  ;;  %v2920_v47 = vpop.eup %2919 }
 0x305   :  { %v545_v48 = vmul.f32 %v2920_v47, %v3207_v27  ;;  %vm347_vm8 = vcmp.eq.f32.partialorder %v337_v46, inf  ;;  %v350_v5 = vand.u32 2147483648, %v337_v46  ;;  %vm349_vm9 = vcmp.eq.f32.partialorder %v337_v46, 0.0  ;;  %v1146_v47 = vld [vmem:[%s3956_s4 + $0x78] sm:$0xff] }
 0x307   :  { %961 = vrot.lane.b32.xlu0 %v545_v48, %s2992_s12 }
 0x308   :  { %v2846_v49 = vpop.permute.xlu0 %2845  ;;  %v2922_v50 = vpop.eup %2921 }
 0x309   :  { %v2848_v51 = vunpack.i.h.bf16 %v2846_v49  ;;  %v2847_v28 = vunpack.i.l.bf16 %v2846_v49  ;;  %v355_v52 = vmul.f32 %v2922_v50, %v3207_v27  ;;  %v1147_v49 = vld [vmem:[%s3956_s4 + $0x80] sm:$0xff]  ;;  %v1148_v50 = vld [vmem:[%s3956_s4 + $0x88] sm:$0xff] }
 0x30b   :  { %v2924_v53 = vpop.eup %2923  ;;  %v2619_v54 = vpack.c.bf16 %v2848_v51, %v2847_v28  ;;  %2438 = vmatmul.mubr.msk.f32.vlgmr.msra.gmra.mrb[2].mxu0 %vm331_vm5, %v355_v52  ;;  %v2699_v51 = vpack.c.bf16 %v1148_v50, %v1147_v49  ;;  %v1647_v49 = vld [vmem:[%s3955_s3 + $0x308] sm:$0xff] }
 0x30c   :  { %v536_v55 = vmul.f32 %v2924_v53, %v527_v45  ;;  %2629 = vmatpush3.bf16.xpose.msk.msra.mxu0 %vm3272_vm12, %v3277_v9  ;;  %2467 = vmatprep.mubr.msk.f32.mxu0 %vm2994_vm6, %v2995_v63 }
 0x30d   :  { %2621 = vmatpush3.bf16.xpose.msk.msra.mxu1 %vm3272_vm12, %v2619_v54  ;;  %2630 = vmatprep.subr.bf16.mxu0 %v2993_v56 }
 0x30e   :  { %v538_v58 = vsel %vm537_vm1, %v527_v45, %v536_v55  ;;  %2622 = vmatprep.subr.bf16.mxu1 %v2993_v56  ;;  %v1598_v55 = vld [vmem:[%s3955_s3 + $0x180] sm:$0xff] }
 0x30f   :  { %v541_v27 = vsel %vm539_vm7, %v540_v57, %v538_v58  ;;  %v1599_v57 = vld [vmem:[%s3955_s3 + $0x188] sm:$0xff] }
 0x310   :  { %v543_v59 = vmax.f32 %v541_v27, 1e-12  ;;  %v2739_v58 = vpack.c.bf16 %v1599_v57, %v1598_v55  ;;  %v1583_v27 = vld [vmem:[%s3955_s3 + $0x108] sm:$0xff] }
 0x311   :  { %v1567_v55 = vld [vmem:[%s3955_s3 + $0x88] sm:$0xff] }
 0x312   :  { %2925 = vrcp.f32 %v543_v59 }
 0x313   :  { %2927 = vrsqrt.f32 %v337_v46 }
 0x314   :  { %2633 = vmatpush3.bf16.xpose.msk.msra.mxu0 %vm3272_vm12, %v3292_v30 }
 0x315   :  { %2634 = vmatprep.subr.bf16.mxu0 %v2993_v56 }
 0x31c   :  { %v2926_v60 = vpop.eup %2925  ;;  %2637 = vmatpush3.bf16.xpose.msk.msra.mxu0 %vm3272_vm12, %v2611_v43 }
 0x31d   :  { %v547_v61 = vmul.f32 %v2926_v60, %v3205_v26  ;;  %2650 = vmatprep.subr.bf16.mxu0 %v2993_v56  ;;  %v2928_v62 = vpop.eup %2927  ;;  %v1600_v60 = vld [vmem:[%s3955_s3 + $0x190] sm:$0xff] }
 0x31e   :  { %v346_v3 = vmul.f32 %v2928_v62, %v337_v46 }
 0x31f   :  { %1036 = vrot.lane.b32.xlu1 %v547_v61, %s2992_s12  ;;  %v812_v2 = vpop.permute.xlu0 %811  ;;  %v1601_v61 = vld [vmem:[%s3955_s3 + $0x198] sm:$0xff] }
 0x320   :  { %v348_v4 = vsel %vm347_vm8, %v337_v46, %v346_v3  ;;  %v1145_v46 = vld [vmem:[%s3956_s4 + $0x70] sm:$0xff] }
 0x321   :  { %v351_v6 = vsel %vm349_vm9, %v350_v5, %v348_v4  ;;  %v2696_v48 = vpack.c.bf16 %v1146_v47, %v1145_v46  ;;  %v2743_v4 = vpack.c.bf16 %v1601_v61, %v1600_v60  ;;  %v1584_v5 = vld [vmem:[%s3955_s3 + $0x110] sm:$0xff]  ;;  %v2767_v46 = vpack.c.bf16 %v1613_v40, %v1612_v39 }
 0x322   :  { %v353_v7 = vmax.f32 %v351_v6, 1e-12  ;;  %v1585_v6 = vld [vmem:[%s3955_s3 + $0x118] sm:$0xff]  ;;  %v1596_v47 = vld [vmem:[%s3955_s3 + $0x170] sm:$0xff] }
 0x323   :  { %2468 = vmatmul.mubr.msk.f32.vlgmr.msra.gmra.mrb[4].mxu0 %vm331_vm5, %v812_v2 }
 0x324   :  { %2653 = vmatpush3.bf16.xpose.msk.msra.mxu0 %vm3272_vm12, %v3277_v9  ;;  %2497 = vmatprep.mubr.msk.f32.mxu0 %vm2994_vm6, %v2995_v63  ;;  %2929 = vrcp.f32 %v353_v7 }
 0x325   :  { %2654 = vmatprep.subr.bf16.mxu0 %v2993_v56 }
 0x32c   :  { %2657 = vmatpush3.bf16.xpose.msk.msra.mxu0 %vm3272_vm12, %v3292_v30  ;;  %v2678_v30 = vpack.c.bf16 %v1134_v29, %v1133_v23  ;;  %v1591_v23 = vld [vmem:[%s3955_s3 + $0x148] sm:$0xff]  ;;  %v1608_v29 = vld [vmem:[%s3955_s3 + $0x1d0] sm:$0xff] }
 0x32d   :  { %2658 = vmatprep.subr.bf16.mxu0 %v2993_v56  ;;  %v2759_v24 = vpack.c.bf16 %v1609_v25, %v1608_v29 }
 0x32e   :  { %v2930_v13 = vpop.eup %2929 }
 0x32f   :  { %v357_v14 = vmul.f32 %v2930_v13, %v3205_v26  ;;  %v1586_v13 = vld [vmem:[%s3955_s3 + $0x120] sm:$0xff] }
 0x334   :  { %2661 = vmatpush3.bf16.xpose.msk.msra.mxu0 %vm3272_vm12, %v2611_v43  ;;  %v1143_v43 = vld [vmem:[%s3956_s4 + $0x60] sm:$0xff]  ;;  %s3000_s4 = smov [#allocation3]  }
 0x335   :  { %v2856_v8 = vpop.permute.xlu1 %2855  ;;  %2674 = vmatprep.subr.bf16.mxu0 %v2993_v56  ;;  %v2693_v45 = vpack.c.bf16 %v1144_v44, %v1143_v43  ;;  %s2094_s13 = sshll.u32 %s3000_s4, 4  ;;  %s2095_s13 = int_to_ptr.vmem [resolvable:$true] %s2094_s13 }
 0x336   :  { %v2858_v0 = vunpack.i.h.bf16 %v2856_v8  ;;  %v2857_v10 = vunpack.i.l.bf16 %v2856_v8  ;;  %v1602_v8 = vld [vmem:[%s3955_s3 + $0x1a0] sm:$0xff]  ;;  %s2965_s14 = scalar_lea.vmem %s2095_s13, 16  ;;  %p2970_p1 = scmp.lt.s32.totalorder %s2095_s13, %s2095_s13 }
 0x337   :  { %p2966_p0 = scmp.ne.s32.totalorder %s2095_s13, %s2965_s14 }
 0x338   :  { %v2623_v12 = vpack.c.bf16 %v2858_v0, %v2857_v10  ;;  %v1603_v0 = vld [vmem:[%s3955_s3 + $0x1a8] sm:$0xff]  ;;  %v2745_v10 = vpack.c.bf16 %v1585_v6, %v1584_v5 }
 0x339   :  { %v887_v26 = vpop.permute.xlu1 %886 }
 0x33a   :  { %2625 = vmatpush3.bf16.xpose.msk.msra.mxu1 %vm3272_vm12, %v2623_v12 }
 0x33b   :  { %2638 = vmatprep.subr.bf16.mxu1 %v2993_v56 }
 0x341   :  { %2453 = vmatmul.mubr.msk.f32.vlgmr.msra.gmra.mrb[4].mxu1 %vm331_vm5, %v357_v14  ;;  %v1587_v14 = vld [vmem:[%s3955_s3 + $0x128] sm:$0xff] }
 0x342   :  { %2641 = vmatpush3.bf16.xpose.msk.msra.mxu1 %vm3272_vm12, %v3286_v11  ;;  %2482 = vmatprep.mubr.msk.f32.mxu1 %vm2994_vm6, %v2995_v63 }
 0x343   :  { %2642 = vmatprep.subr.bf16.mxu1 %v2993_v56 }
 0x34a   :  { %2645 = vmatpush3.bf16.xpose.msk.msra.mxu1 %vm3272_vm12, %v2619_v54 }
 0x34b   :  { %2646 = vmatprep.subr.bf16.mxu1 %v2993_v56 }
 0x352   :  { %2649 = vmatpush3.bf16.xpose.msk.msra.mxu1 %vm3272_vm12, %v2623_v12 }
 0x353   :  { %2662 = vmatprep.subr.bf16.mxu1 %v2993_v56 }
 0x359   :  { %2483 = vmatmul.mubr.msk.f32.vlgmr.msra.gmra.mrb[6].mxu1 %vm331_vm5, %v887_v26  ;;  %v1604_v26 = vld [vmem:[%s3955_s3 + $0x1b0] sm:$0xff] }
 0x35a   :  { %2665 = vmatpush3.bf16.xpose.msk.msra.mxu1 %vm3272_vm12, %v3286_v11  ;;  %2512 = vmatprep.mubr.msk.f32.mxu1 %vm2994_vm6, %v2995_v63  ;;  %v2675_v11 = vpack.c.bf16 %v1132_v21, %v1131_v20  ;;  %v1589_v20 = vld [vmem:[%s3955_s3 + $0x138] sm:$0xff]  ;;  %v1606_v21 = vld [vmem:[%s3955_s3 + $0x1c0] sm:$0xff] }
 0x35b   :  { %2666 = vmatprep.subr.bf16.mxu1 %v2993_v56 }
 0x362   :  { %2669 = vmatpush3.bf16.xpose.msk.msra.mxu1 %vm3272_vm12, %v2619_v54 }
 0x363   :  { %2670 = vmatprep.subr.bf16.mxu1 %v2993_v56 }
 0x36a   :  { %2673 = vmatpush3.bf16.xpose.msk.msra.mxu1 %vm3272_vm12, %v2623_v12  ;;  %v2747_v12 = vpack.c.bf16 %v1603_v0, %v1602_v8  ;;  %vm2999_vm12 = vmmov 1  }
 0x36b   :  { %vm2702_vm13 = vmpackc.low %vm1243_vm11, %vm2999_vm12 }
 0x379   :  { %v962_v1 = vpop.permute.xlu0 %961 }
 0x37a   :  { %2498 = vmatmul.mubr.msk.f32.vlgmr.msra.gmra.mrb[6].mxu0 %vm331_vm5, %v962_v1  ;;  %v1605_v1 = vld [vmem:[%s3955_s3 + $0x1b8] sm:$0xff] }
 0x37b   :  { %2676 = vmatpush1.bf16.msra.mxu0 %v2675_v11  ;;  %v1607_v11 = vld [vmem:[%s3955_s3 + $0x1c8] sm:$0xff] }
 0x37c   :  { %2677 = vmatprep.subr.bf16.mxu0 %v2993_v56 }
 0x37f   :  { %2679 = vmatpush1.bf16.msra.mxu0 %v2678_v30 }
 0x380   :  { %2680 = vmatprep.subr.bf16.mxu0 %v2993_v56 }
 0x383   :  { %2682 = vmatpush1.bf16.msra.mxu0 %v2681_v31  ;;  %v1592_v31 = vld [vmem:[%s3955_s3 + $0x150] sm:$0xff] }
 0x384   :  { %2683 = vmatprep.subr.bf16.mxu0 %v2993_v56  ;;  %v2761_v33 = vpack.c.bf16 %v1593_v32, %v1592_v31 }
 0x387   :  { %2685 = vmatpush1.bf16.msra.mxu0 %v2684_v34  ;;  %v1610_v34 = vld [vmem:[%s3955_s3 + $0x1e0] sm:$0xff] }
 0x388   :  { %2686 = vmatprep.subr.bf16.mxu0 %v2993_v56 }
 0x38b   :  { %2688 = vmatpush1.bf16.msra.mxu0 %v2687_v37  ;;  %v1594_v37 = vld [vmem:[%s3955_s3 + $0x160] sm:$0xff] }
 0x38c   :  { %2689 = vmatprep.subr.bf16.mxu0 %v2993_v56 }
 0x38f   :  { %2691 = vmatpush1.bf16.msra.mxu0 %v2690_v42 }
 0x390   :  { %2692 = vmatprep.subr.bf16.mxu0 %v2993_v56 }
 0x391   :  { %v1037_v16 = vpop.permute.xlu1 %1036 }
 0x392   :  { %2513 = vmatmul.mubr.msk.f32.vlgmr.msra.gmra.mrb[8].mxu1 %vm331_vm5, %v1037_v16  ;;  %v2749_v16 = vpack.c.bf16 %v1587_v14, %v1586_v13  ;;  %v3635_v13 = vld [vmem:[%s3958_s6 + $0x1] ss:$2 sm:$0x7f] }
 0x393   :  { %2694 = vmatpush1.bf16.msra.mxu0 %v2693_v45 }
 0x394   :  { %2695 = vmatprep.subr.bf16.mxu0 %v2993_v56 }
 0x397   :  { %2697 = vmatpush1.bf16.msra.mxu0 %v2696_v48  ;;  %v1646_v48 = vld [vmem:[%s3955_s3 + $0x300] sm:$0xff] }
 0x398   :  { %2698 = vmatprep.subr.bf16.mxu0 %v2993_v56  ;;  %v1582_v56 = vld [vmem:[%s3955_s3 + $0x100] sm:$0xff] }
 0x399   :  { %v2741_v62 = vpack.c.bf16 %v1583_v27, %v1582_v56 }
 0x39b   :  { %2700 = vmatpush1.bf16.msra.mxu0 %v2699_v51  ;;  %v3586_v51 = vpack.c.bf16 %v1647_v49, %v1646_v48  ;;  %v1650_v49 = vld [vmem:[%s3955_s3 + $0x320] sm:$0xff] }
 0x39c   :  { %2740 = vmatprep.subr.bf16.mxu0 %v2739_v58  ;;  %v1409_v58 = vlaneseq }
 0x39e   :  { %v3617_v27 = vshrl.u32 %v1409_v58, 7 }
 0x3a0   :  { %v1419_v60 = vsub.s32 2, %v3617_v27  ;;  %v1423_v5 = vsub.s32 3, %v3617_v27 }
 0x3de   :  { %v3368_v9 = vpop.f32.mrb[2].mxu0 }
 0x3df   :  { %v2439_v17 = vpop.f32.mrb[3].mxu0 }
 0x3e0   :  { %v1588_v17 = vld [vmem:[%s3955_s3 + $0x130] sm:$0xff] }
 0x3f6   :  { %v881_v15 = vpop.f32.mrb[4].mxu0 }
 0x3f7   :  { %1112 = vrot.lane.b32.xlu0 %v881_v15, %s2996_s17  ;;  %v2469_v18 = vpop.f32.mrb[5].mxu0  ;;  %v2753_v15 = vpack.c.bf16 %v1589_v20, %v1588_v17 }
 0x3f8   :  { %v2755_v18 = vpack.c.bf16 %v1607_v11, %v1606_v21  ;;  %v1488_v21 = vrot.slane %v3635_v13, %v1423_v5 }
 0x414   :  { %v3378_v19 = vpop.f32.mrb[4].mxu1 }
 0x415   :  { %v2454_v22 = vpop.f32.mrb[5].mxu1 }
 0x416   :  { %v1590_v22 = vld [vmem:[%s3955_s3 + $0x140] sm:$0xff] }
 0x417   :  { %v2757_v30 = vpack.c.bf16 %v1591_v23, %v1590_v22 }
 0x42c   :  { %v956_v38 = vpop.f32.mrb[6].mxu1 }
 0x42d   :  { %1114 = vrot.lane.b32.xlu0 %v956_v38, %s2996_s17  ;;  %v2484_v41 = vpop.f32.mrb[7].mxu1  ;;  %v1595_v38 = vld [vmem:[%s3955_s3 + $0x168] sm:$0xff] }
 0x42e   :  { %v2763_v41 = vpack.c.bf16 %v1611_v35, %v1610_v34  ;;  %v2765_v44 = vpack.c.bf16 %v1595_v38, %v1594_v37  ;;  %v1648_v37 = vld [vmem:[%s3955_s3 + $0x310] sm:$0xff]  ;;  %v1649_v38 = vld [vmem:[%s3955_s3 + $0x318] sm:$0xff] }
 0x44d   :  { %v1031_v28 = vpop.f32.mrb[6].mxu0 }
 0x44e   :  { %1120 = vrot.lane.b32.xlu1 %v1031_v28, %s2992_s12  ;;  %v2499_v52 = vpop.f32.mrb[7].mxu0  ;;  %v1234_v28 = vld [vmem:[%s3957_s5] sm:$0xff] }
 0x44f   :  { %v1235_v52 = vld [vmem:[%s3957_s5 + $0x8] sm:$0x1] }
 0x465   :  { %v1106_v53 = vpop.f32.mrb[8].mxu1 }
 0x466   :  { %1122 = vrot.lane.b32.xlu1 %v1106_v53, %s2992_s12  ;;  %v2514_v54 = vpop.f32.mrb[9].mxu1  ;;  %v2701_v53 = vpack.c.bf16 %v1235_v52, %v1234_v28 }
 0x467   :  { %v1566_v54 = vld [vmem:[%s3955_s3 + $0x80] sm:$0xff] }
 0x468   :  { %2703 = vmatprep.subr.msk.bf16.mxu1 %vm2702_vm13, %v2701_v53  ;;  %v2707_v57 = vpack.c.bf16 %v1567_v55, %v1566_v54 }
 0x469   :  { %v1113_v59 = vpop.permute.xlu0 %1112  ;;  %2706 = vmatpush3.bf16.msk.msra.mxu1 %vm2702_vm13, %v2701_v53 }
 0x46a   :  { %v1127_v2 = vsel %vm1126_vm10, %v3368_v9, %v1113_v59  ;;  %v2751_v9 = vpack.c.bf16 %v1605_v1, %v1604_v26  ;;  %2708 = vmatprep.subr.bf16.mxu1 %v2707_v57  ;;  %v1484_v26 = vrot.slane %v3635_v13, %v1419_v60 }
 0x49f   :  { %v1115_v36 = vpop.permute.xlu0 %1114 }
 0x4a0   :  { %v1128_v42 = vsel %vm1126_vm10, %v3378_v19, %v1115_v36  ;;  %v1597_v19 = vld [vmem:[%s3955_s3 + $0x178] sm:$0xff] }
 0x4a1   :  { %v2769_v50 = vpack.c.bf16 %v1597_v19, %v1596_v47  ;;  %v2807_v47 = vpack.c.bf16 %v1649_v38, %v1648_v37 }
 0x4c0   :  { %v3458_v3 = vpop.permute.xlu1 %1120 }
 0x4c1   :  { %2150 = vmatprep.mubr.msk.f32.mxu0 %vm331_vm5, %v3458_v3  ;;  %1329 = vrot.lane.b32.xlu1 %v3458_v3, %s2997_s24  ;;  %v3472_v7 = vsel %vm150_vm4, %v1127_v2, %v3458_v3 }
 0x4c2   :  { %1218 = vmatmul.mubr.f32.vlgmr.msra.gmra.mrb[8].mxu0 %v3472_v7  ;;  %1327 = vrot.lane.b32.xlu0 %v3472_v7, %s2997_s24 }
 0x4c3   :  { %2742 = vmatpush3.bf16.msra.mxu0 %v2741_v62  ;;  %v3625_v62 = vld [vmem:[%s3958_s6] ss:$2 sm:$0x7f] }
 0x4c4   :  { %2744 = vmatprep.subr.bf16.mxu0 %v2743_v4  ;;  %v1420_v4 = vrot.slane %v3625_v62, %v1419_v60  ;;  %v1424_v14 = vrot.slane %v3625_v62, %v1423_v5  ;;  %v1653_v5 = vld [vmem:[%s3955_s3 + $0x338] sm:$0xff] }
 0x4c5   :  { %1371 = vrot.lane.b32.xlu1 %v3458_v3, %s2989_s21 }
 0x4c6   :  { %1343 = vrot.lane.b32.xlu0 %v3458_v3, %s2990_s22 }
 0x4c7   :  { %2746 = vmatpush3.bf16.msra.mxu0 %v2745_v10 }
 0x4c8   :  { %2748 = vmatprep.subr.bf16.mxu0 %v2747_v12 }
 0x4c9   :  { %1341 = vrot.lane.b32.xlu1 %v3472_v7, %s2990_s22 }
 0x4ca   :  { %1357 = vrot.lane.b32.xlu0 %v3458_v3, %s2996_s17 }
 0x4cb   :  { %2750 = vmatpush3.bf16.msra.mxu0 %v2749_v16 }
 0x4cc   :  { %2752 = vmatprep.subr.bf16.mxu0 %v2751_v9 }
 0x4cd   :  { %1383 = vrot.lane.b32.xlu1 %v3472_v7, %s2998_s28 }
 0x4ce   :  { %1355 = vrot.lane.b32.xlu0 %v3472_v7, %s2996_s17 }
 0x4cf   :  { %2754 = vmatpush3.bf16.msra.mxu0 %v2753_v15 }
 0x4d0   :  { %2756 = vmatprep.subr.bf16.mxu0 %v2755_v18 }
 0x4d2   :  { %1369 = vrot.lane.b32.xlu0 %v3472_v7, %s2989_s21 }
 0x4d3   :  { %2758 = vmatpush3.bf16.msra.mxu0 %v2757_v30 }
 0x4d4   :  { %2760 = vmatprep.subr.bf16.mxu0 %v2759_v24 }
 0x4d7   :  { %2762 = vmatpush3.bf16.msra.mxu0 %v2761_v33 }
 0x4d8   :  { %v3559_v43 = vpop.permute.xlu1 %1122  ;;  %2764 = vmatprep.subr.bf16.mxu0 %v2763_v41 }
 0x4d9   :  { %2151 = vmatprep.mubr.msk.f32.mxu0 %vm331_vm5, %v3559_v43  ;;  %1333 = vrot.lane.b32.xlu0 %v3559_v43, %s2997_s24  ;;  %v3567_v45 = vsel %vm150_vm4, %v1128_v42, %v3559_v43  ;;  %v1435_v42 = vsub.s32 6, %v3617_v27 }
 0x4da   :  { %1347 = vrot.lane.b32.xlu1 %v3559_v43, %s2990_s22  ;;  %1223 = vmatmul.mubr.f32.gmra.mrb[10].mxu0 %v3567_v45 }
 0x4db   :  { %2766 = vmatpush3.bf16.msra.mxu0 %v2765_v44  ;;  %v1436_v55 = vrot.slane %v3625_v62, %v1435_v42 }
 0x4dc   :  { %2768 = vmatprep.subr.bf16.mxu0 %v2767_v46 }
 0x4dd   :  { %1345 = vrot.lane.b32.xlu0 %v3567_v45, %s2990_s22 }
 0x4de   :  { %1375 = vrot.lane.b32.xlu1 %v3559_v43, %s2989_s21 }
 0x4df   :  { %2770 = vmatpush3.bf16.msra.mxu0 %v2769_v50  ;;  %v1651_v50 = vld [vmem:[%s3955_s3 + $0x328] sm:$0xff] }
 0x4e0   :  { %2804 = vmatprep.subr.bf16.mxu0 %v3586_v51  ;;  %v2811_v60 = vpack.c.bf16 %v1651_v50, %v1650_v49 }
 0x4e1   :  { %1373 = vrot.lane.b32.xlu0 %v3567_v45, %s2989_s21  ;;  %s2969_s21 = scalar_lea.vmem %s2095_s13, 32 }
 0x4e2   :  { %1331 = vrot.lane.b32.xlu1 %v3567_v45, %s2997_s24  ;;  %p2971_p2 = scmp.lt.s32.totalorder %s2969_s21, %s2965_s14 }
 0x4e4   :  { %p2972_p3 = por %p2971_p2, %p2970_p1 }
 0x4e5   :  { %1361 = vrot.lane.b32.xlu0 %v3559_v43, %s2996_s17 }
 0x4e6   :  { %1359 = vrot.lane.b32.xlu1 %v3567_v45, %s2996_s17  ;;  %p2973_p4 = pnand %p2972_p3, %p2966_p0 }
 0x4e9   :  { %1385 = vrot.lane.b32.xlu0 %v3458_v3, %s2998_s28 }
 0x4ea   :  { %1387 = vrot.lane.b32.xlu1 %v3567_v45, %s2998_s28 }
 0x4ee   :  { %1389 = vrot.lane.b32.xlu1 %v3559_v43, %s2998_s28 }
 0x533   :  { %v1330_v56 = vpop.permute.xlu1 %1329 }
 0x534   :  { %v3619_v59 = vpop.permute.xlu0 %1327 }
 0x535   :  { %v1335_v6 = vsel %vm331_vm5, %v3619_v59, %v1330_v56 }
 0x537   :  { %v1372_v61 = vpop.permute.xlu1 %1371 }
 0x538   :  { %v1344_v2 = vpop.permute.xlu0 %1343 }
 0x53b   :  { %v1342_v8 = vpop.permute.xlu1 %1341 }
 0x53c   :  { %v1400_v0 = vsel %vm74_vm2, %v1335_v6, %v1342_v8  ;;  %v1358_v10 = vpop.permute.xlu0 %1357  ;;  %v1349_v16 = vsel %vm74_vm2, %v1342_v8, %v1344_v2 }
 0x53d   :  { %v1446_v12 = vsub.f32 %v1400_v0, %v1420_v4 }
 0x53f   :  { %v1460_v1 = vmul.f32 %v1446_v12, %v1446_v12  ;;  %v1384_v23 = vpop.permute.xlu1 %1383  ;;  %v1500_v12 = vrot.slane %v3635_v13, %v1435_v42  ;;  %v1415_v42 = vsub.s32 1, %v3617_v27 }
 0x540   :  { %v1356_v9 = vpop.permute.xlu0 %1355 }
 0x541   :  { %v1363_v17 = vsel %vm1126_vm10, %v1356_v9, %v1358_v10  ;;  %v1402_v20 = vsel %vm1126_vm10, %v1349_v16, %v1356_v9  ;;  %v1510_v15 = vmul.f32 %v1484_v26, %v1460_v1  ;;  %v1480_v50 = vrot.slane %v3635_v13, %v1415_v42 }
 0x542   :  { %v1447_v11 = vsub.f32 %v1402_v20, %v1424_v14 }
 0x543   :  { %v1526_v31 = vmul.f32 1.442695, %v1510_v15 }
 0x544   :  { %v1461_v18 = vmul.f32 %v1447_v11, %v1447_v11  ;;  %v1370_v22 = vpop.permute.xlu0 %1369 }
 0x545   :  { %v1377_v29 = vsel %vm77_vm3, %v1370_v22, %v1372_v61  ;;  %v3645_v25 = vsel %vm77_vm3, %v1363_v17, %v1370_v22  ;;  %v1654_v17 = vld [vmem:[%s3955_s3 + $0x340] sm:$0xff] }
 0x546   :  { %v1511_v30 = vmul.f32 %v1488_v21, %v1461_v18  ;;  %v3648_v24 = vsel %vm1391_vm14, %v1377_v29, %v1384_v23 }
 0x548   :  { %v1528_v32 = vmul.f32 1.442695, %v1511_v30  ;;  %v1656_v30 = vld [vmem:[%s3955_s3 + $0x350] sm:$0xff] }
 0x54a   :  { %2931 = vpow2.f32 %v1528_v32 }
 0x54b   :  { %v1334_v33 = vpop.permute.xlu0 %1333  ;;  %2933 = vpow2.f32 %v1526_v31  ;;  %v1657_v31 = vld [vmem:[%s3955_s3 + $0x358] sm:$0xff] }
 0x54c   :  { %v1348_v34 = vpop.permute.xlu1 %1347 }
 0x54f   :  { %v1346_v35 = vpop.permute.xlu0 %1345 }
 0x550   :  { %v1376_v36 = vpop.permute.xlu1 %1375  ;;  %v1350_v53 = vsel %vm74_vm2, %v1346_v35, %v1348_v34  ;;  %v2823_v34 = vpack.c.bf16 %v1657_v31, %v1656_v30 }
 0x553   :  { %v1374_v39 = vpop.permute.xlu0 %1373 }
 0x554   :  { %v1378_v40 = vsel %vm77_vm3, %v1374_v39, %v1376_v36  ;;  %v3657_v41 = vpop.permute.xlu1 %1331  ;;  %v2932_v44 = vpop.eup %2931 }
 0x555   :  { %v1336_v46 = vsel %vm331_vm5, %v3657_v41, %v1334_v33  ;;  %v2934_v19 = vpop.eup %2933  ;;  %1803 = vmatprep.mubr.f32.mxu0 %v2932_v44  ;;  %v1416_v44 = vrot.slane %v3625_v62, %v1415_v42 }
 0x556   :  { %v1401_v48 = vsel %vm74_vm2, %v1336_v46, %v1346_v35  ;;  %1804 = vmatmul.mubr.f32.vlgmr.msra.gmra.mrb[12].mxu0 %v2934_v19  ;;  %v1398_v46 = vsel %vm331_vm5, %v3458_v3, %v3619_v59  ;;  %vm1236_vm2 = vcmask 72704   ;;  %v1551_v3 = vld [vmem:[%s3955_s3 + $0x8] sm:$0xff]  ;;  %v1568_v59 = vld [vmem:[%s3955_s3 + $0x90] sm:$0xff] }
 0x557   :  { %v1453_v28 = vsub.f32 %v1401_v48, %v1420_v4  ;;  %v1362_v52 = vpop.permute.xlu0 %1361  ;;  %2806 = vmatpush3.bf16.msra.mxu0 %v3586_v51  ;;  %v1652_v4 = vld [vmem:[%s3955_s3 + $0x330] sm:$0xff] }
 0x558   :  { %v1360_v54 = vpop.permute.xlu1 %1359  ;;  %2808 = vmatprep.subr.bf16.mxu0 %v2807_v47  ;;  %v2815_v16 = vpack.c.bf16 %v1653_v5, %v1652_v4  ;;  %v1552_v4 = vld [vmem:[%s3955_s3 + $0x10] sm:$0xff]  ;;  %v1553_v5 = vld [vmem:[%s3955_s3 + $0x18] sm:$0xff] }
 0x559   :  { %v1467_v57 = vmul.f32 %v1453_v28, %v1453_v28  ;;  %v1364_v58 = vsel %vm1126_vm10, %v1360_v54, %v1362_v52  ;;  %v1403_v56 = vsel %vm1126_vm10, %v1350_v53, %v1360_v54  ;;  %v1550_v54 = vld [vmem:[%s3955_s3] sm:$0xff] }
 0x55a   :  { %v3675_v61 = vsel %vm77_vm3, %v1364_v58, %v1374_v39  ;;  %v1454_v2 = vsub.f32 %v1403_v56, %v1424_v14  ;;  %v2709_v56 = vpack.c.bf16 %v1551_v3, %v1550_v54 }
 0x55b   :  { %v1517_v51 = vmul.f32 %v1484_v26, %v1467_v57  ;;  %v1386_v6 = vpop.permute.xlu0 %1385  ;;  %2810 = vmatpush3.bf16.msra.mxu0 %v2807_v47  ;;  %v1655_v26 = vld [vmem:[%s3955_s3 + $0x348] sm:$0xff]  ;;  %v1445_v47 = vsub.f32 %v1398_v46, %v1416_v44  ;;  %v1411_v57 = vsub.s32 0, %v3617_v27 }
 0x55c   :  { %v1468_v8 = vmul.f32 %v1454_v2, %v1454_v2  ;;  %v1392_v0 = vsel %vm1391_vm14, %v1384_v23, %v1386_v6  ;;  %v1388_v10 = vpop.permute.xlu1 %1387  ;;  %2812 = vmatprep.subr.bf16.mxu0 %v2811_v60  ;;  %v2819_v29 = vpack.c.bf16 %v1655_v26, %v1654_v17  ;;  %v1570_v6 = vld [vmem:[%s3955_s3 + $0xa0] sm:$0xff]  ;;  %v1555_v17 = vld [vmem:[%s3955_s3 + $0x28] sm:$0xff]  ;;  %v1399_v26 = vsel %vm331_vm5, %v3559_v43, %v3657_v41  ;;  %v1556_v43 = vld [vmem:[%s3955_s3 + $0x30] sm:$0xff] }
 0x55d   :  { %v1450_v1 = vsub.f32 %v1392_v0, %v1436_v55  ;;  %v3686_v14 = vsel %vm1391_vm14, %v1378_v40, %v1388_v10  ;;  %v1540_v20 = vmul.f32 1.442695, %v1517_v51  ;;  %v1459_v28 = vmul.f32 %v1445_v47, %v1445_v47  ;;  %v1557_v41 = vld [vmem:[%s3955_s3 + $0x38] sm:$0xff] }
 0x55e   :  { %v1518_v9 = vmul.f32 %v1488_v21, %v1468_v8  ;;  %v1571_v8 = vld [vmem:[%s3955_s3 + $0xa8] sm:$0xff]  ;;  %v1476_v31 = vrot.slane %v3635_v13, %v1411_v57  ;;  %vm1966_vm5 = vcmask 441344  }
 0x55f   :  { %v1464_v11 = vmul.f32 %v1450_v1, %v1450_v1  ;;  %2814 = vmatpush3.bf16.msra.mxu0 %v2811_v60  ;;  %v1509_v52 = vmul.f32 %v1480_v50, %v1459_v28  ;;  %v1431_v1 = vsub.s32 5, %v3617_v27  ;;  %v1578_v28 = vld [vmem:[%s3955_s3 + $0xe0] sm:$0xff] }
 0x560   :  { %v1542_v15 = vmul.f32 1.442695, %v1518_v9  ;;  %v1390_v18 = vpop.permute.xlu1 %1389  ;;  %2816 = vmatprep.subr.bf16.mxu0 %v2815_v16  ;;  %v1554_v9 = vld [vmem:[%s3955_s3 + $0x20] sm:$0xff] }
 0x561   :  { %v1514_v22 = vmul.f32 %v1500_v12, %v1464_v11  ;;  %v1393_v23 = vsel %vm1391_vm14, %v1388_v10, %v1390_v18  ;;  %v1524_v53 = vmul.f32 1.442695, %v1509_v52  ;;  %v1412_v10 = vrot.slane %v3625_v62, %v1411_v57  ;;  %v1573_v11 = vld [vmem:[%s3955_s3 + $0xb8] sm:$0xff]  ;;  %v1562_v57 = vld [vmem:[%s3955_s3 + $0x60] sm:$0xff] }
 0x562   :  { %2935 = vpow2.f32 %v1542_v15  ;;  %v1457_v21 = vsub.f32 %v1393_v23, %v1436_v55  ;;  %v1569_v55 = vld [vmem:[%s3955_s3 + $0x98] sm:$0xff]  ;;  %v2717_v18 = vpack.c.bf16 %v1555_v17, %v1554_v9  ;;  %v3757_v23 = vrot.slane %v3625_v62, %v1431_v1  ;;  %v1615_v9 = vld [vmem:[%s3955_s3 + $0x208] sm:$0xff]  ;;  %v1632_v17 = vld [vmem:[%s3955_s3 + $0x290] sm:$0xff] }
 0x563   :  { %2937 = vpow2.f32 %v1540_v20  ;;  %v1534_v32 = vmul.f32 1.442695, %v1514_v22  ;;  %2818 = vmatpush3.bf16.msra.mxu0 %v2815_v16  ;;  %v2711_v2 = vpack.c.bf16 %v1569_v55, %v1568_v59  ;;  %v2715_v16 = vpack.c.bf16 %v1571_v8, %v1570_v6  ;;  %v1572_v20 = vld [vmem:[%s3955_s3 + $0xb0] sm:$0xff]  ;;  %v1565_v8 = vld [vmem:[%s3955_s3 + $0x78] sm:$0xff] }
 0x564   :  { %v1471_v33 = vmul.f32 %v1457_v21, %v1457_v21  ;;  %2820 = vmatprep.subr.bf16.mxu0 %v2819_v29  ;;  %v1444_v15 = vsub.f32 %v3472_v7, %v1412_v10  ;;  %v1452_v22 = vsub.f32 %v1399_v26, %v1416_v44  ;;  %v1574_v7 = vld [vmem:[%s3955_s3 + $0xc0] sm:$0xff]  ;;  %v1575_v21 = vld [vmem:[%s3955_s3 + $0xc8] sm:$0xff]  ;;  %v3788_v47 = vrot.slane %v3635_v13, %v1431_v1  ;;  %v1564_v6 = vld [vmem:[%s3955_s3 + $0x70] sm:$0xff] }
 0x565   :  { %2939 = vpow2.f32 %v1534_v32  ;;  %v2721_v32 = vpack.c.bf16 %v1557_v41, %v1556_v43  ;;  %v1633_v26 = vld [vmem:[%s3955_s3 + $0x298] sm:$0xff]  ;;  %v1634_v43 = vld [vmem:[%s3955_s3 + $0x2a0] sm:$0xff] }
 0x566   :  { %v1521_v35 = vmul.f32 %v1500_v12, %v1471_v33  ;;  %v2713_v12 = vpack.c.bf16 %v1553_v5, %v1552_v4  ;;  %v1458_v30 = vmul.f32 %v1444_v15, %v1444_v15  ;;  %v1451_v33 = vsub.f32 %v3567_v45, %v1412_v10  ;;  %v1577_v45 = vld [vmem:[%s3955_s3 + $0xd8] sm:$0xff]  ;;  %v1631_v10 = vld [vmem:[%s3955_s3 + $0x288] sm:$0xff] }
 0x567   :  { %2822 = vmatpush3.bf16.msra.mxu0 %v2819_v29  ;;  %v2719_v29 = vpack.c.bf16 %v1573_v11, %v1572_v20  ;;  %v1427_v20 = vsub.s32 4, %v3617_v27  ;;  %v2775_v15 = vpack.c.bf16 %v1633_v26, %v1632_v17  ;;  %v1635_v27 = vld [vmem:[%s3955_s3 + $0x2a8] sm:$0xff] }
 0x568   :  { %v1548_v36 = vmul.f32 1.442695, %v1521_v35  ;;  %2824 = vmatprep.subr.bf16.mxu0 %v2823_v34  ;;  %v1449_v35 = vsub.f32 %v3648_v24, %v3757_v23  ;;  %v1465_v42 = vmul.f32 %v1451_v33, %v1451_v33 }
 0x56a   :  { %2941 = vpow2.f32 %v1548_v36  ;;  %v2723_v36 = vpack.c.bf16 %v1575_v21, %v1574_v7  ;;  %v1463_v46 = vmul.f32 %v1449_v35, %v1449_v35  ;;  %v1515_v54 = vmul.f32 %v1476_v31, %v1465_v42 }
 0x56b   :  { %2826 = vmatpush3.bf16.msra.mxu0 %v2823_v34  ;;  %2943 = vpow2.f32 %v1524_v53  ;;  %v1466_v34 = vmul.f32 %v1452_v22, %v1452_v22  ;;  %v1617_v22 = vld [vmem:[%s3955_s3 + $0x218] sm:$0xff]  ;;  %v1428_v7 = vrot.slane %v3625_v62, %v1427_v20 }
 0x56c   :  { %v2936_v37 = vpop.eup %2935  ;;  %v1513_v59 = vmul.f32 %v3788_v47, %v1463_v46  ;;  %v1536_v4 = vmul.f32 1.442695, %v1515_v54  ;;  %v1637_v62 = vld [vmem:[%s3955_s3 + $0x2b8] sm:$0xff] }
 0x56d   :  { %v2938_v38 = vpop.eup %2937  ;;  %1808 = vmatprep.mubr.f32.mxu0 %v2936_v37  ;;  %v1558_v37 = vld [vmem:[%s3955_s3 + $0x40] sm:$0xff]  ;;  %v1516_v44 = vmul.f32 %v1480_v50, %v1466_v34  ;;  %v1579_v50 = vld [vmem:[%s3955_s3 + $0xe8] sm:$0xff]  ;;  %v1636_v34 = vld [vmem:[%s3955_s3 + $0x2b0] sm:$0xff]  ;;  %v1455_v42 = vsub.f32 %v3675_v61, %v1428_v7 }
 0x56e   :  { %1809 = vmatmul.mubr.f32.gmra.mrb[14].mxu0 %v2938_v38  ;;  %v1559_v38 = vld [vmem:[%s3955_s3 + $0x48] sm:$0xff]  ;;  %v2731_v55 = vpack.c.bf16 %v1579_v50, %v1578_v28  ;;  %v1532_v5 = vmul.f32 1.442695, %v1513_v59  ;;  %v1641_v61 = vld [vmem:[%s3955_s3 + $0x2d8] sm:$0xff] }
 0x56f   :  { %v2940_v39 = vpop.eup %2939  ;;  %v2725_v24 = vpack.c.bf16 %v1559_v38, %v1558_v37  ;;  %v1538_v3 = vmul.f32 1.442695, %v1516_v44  ;;  %v1456_v38 = vsub.f32 %v3686_v14, %v3757_v23  ;;  %v1492_v14 = vrot.slane %v3635_v13, %v1427_v20  ;;  %v1640_v13 = vld [vmem:[%s3955_s3 + $0x2d0] sm:$0xff]  ;;  %v1625_v59 = vld [vmem:[%s3955_s3 + $0x258] sm:$0xff] }
 0x570   :  { %2546 = vmatprep.mubr.msk.f32.mxu0 %vm150_vm4, %v2940_v39  ;;  %v1576_v39 = vld [vmem:[%s3955_s3 + $0xd0] sm:$0xff]  ;;  %v1469_v50 = vmul.f32 %v1455_v42, %v1455_v42  ;;  %v2791_v54 = vpack.c.bf16 %v1641_v61, %v1640_v13 }
 0x571   :  { %v1470_v46 = vmul.f32 %v1456_v38, %v1456_v38 }
 0x574   :  { %v2942_v40 = vpop.eup %2941 }
 0x575   :  { %2547 = vmatmul.mubr.msk.f32.vlgmr.msra.gmra.mrb[16].mxu0 %vm150_vm4, %v2942_v40  ;;  %v2944_v0 = vpop.eup %2943  ;;  %v1508_v40 = vmul.f32 %v1476_v31, %v1458_v30  ;;  %v2779_v30 = vpack.c.bf16 %v1635_v27, %v1634_v43  ;;  %v1618_v31 = vld [vmem:[%s3955_s3 + $0x220] sm:$0xff] }
 0x577   :  { %v1522_v52 = vmul.f32 1.442695, %v1508_v40  ;;  %v1621_v40 = vld [vmem:[%s3955_s3 + $0x238] sm:$0xff] }
 0x579   :  { %2945 = vpow2.f32 %v1522_v52 }
 0x57a   :  { %2947 = vpow2.f32 %v1538_v3  ;;  %v1624_v3 = vld [vmem:[%s3955_s3 + $0x250] sm:$0xff] }
 0x57b   :  { %2949 = vpow2.f32 %v1536_v4  ;;  %v1626_v4 = vld [vmem:[%s3955_s3 + $0x260] sm:$0xff] }
 0x57c   :  { %2951 = vpow2.f32 %v1532_v5  ;;  %v1627_v5 = vld [vmem:[%s3955_s3 + $0x268] sm:$0xff] }
 0x595   :  { %v1219_v19 = vpop.f32.mrb[8].mxu0 }
 0x596   :  { %vm1228_vm3 = vcmp.ne.f32.partialorder %v1219_v19, 0.0  ;;  %v1221_v48 = vpop.f32.mrb[9].mxu0  ;;  %v2727_v19 = vpack.c.bf16 %v1577_v45, %v1576_v39  ;;  %v2783_v39 = vpack.c.bf16 %v1637_v62, %v1636_v34  ;;  %v1620_v45 = vld [vmem:[%s3955_s3 + $0x230] sm:$0xff] }
 0x597   :  { %v2152_v49 = vsel %vm1228_vm3, 1.0, %v2995_v63  ;;  %v1560_v48 = vld [vmem:[%s3955_s3 + $0x50] sm:$0xff]  ;;  %v2785_v44 = vpack.c.bf16 %v1621_v40, %v1620_v45 }
 0x598   :  { %2519 = vmatprep.mubr.msk.f32.mxu1 %vm1236_vm2, %v2152_v49  ;;  %v1561_v49 = vld [vmem:[%s3955_s3 + $0x58] sm:$0xff] }
 0x599   :  { %v2729_v53 = vpack.c.bf16 %v1561_v49, %v1560_v48  ;;  %v1622_v48 = vld [vmem:[%s3955_s3 + $0x240] sm:$0xff]  ;;  %v1623_v49 = vld [vmem:[%s3955_s3 + $0x248] sm:$0xff] }
 0x59a   :  { %v2789_v52 = vpack.c.bf16 %v1623_v49, %v1622_v48 }
 0x5ad   :  { %v1224_v58 = vpop.f32.mrb[10].mxu0 }
 0x5ae   :  { %vm1229_vm4 = vcmp.ne.f32.partialorder %v1224_v58, 0.0  ;;  %v1226_v60 = vpop.f32.mrb[11].mxu0  ;;  %v1563_v58 = vld [vmem:[%s3955_s3 + $0x68] sm:$0xff] }
 0x5af   :  { %v2153_v51 = vsel %vm1229_vm4, 1.0, %v2995_v63  ;;  %v1581_v60 = vld [vmem:[%s3955_s3 + $0xf8] sm:$0xff] }
 0x5b0   :  { %2520 = vmatmul.mubr.msk.f32.vlgmr.msra.gmra.mrb[10].mxu1 %vm1236_vm2, %v2153_v51 }
 0x5b1   :  { %2710 = vmatpush3.bf16.msra.mxu1 %v2709_v56  ;;  %1728 = vmatprep.mubr.f32.mxu1 %v2944_v0  ;;  %v1580_v56 = vld [vmem:[%s3955_s3 + $0xf0] sm:$0xff]  ;;  %v1630_v0 = vld [vmem:[%s3955_s3 + $0x280] sm:$0xff] }
 0x5b2   :  { %2712 = vmatprep.subr.bf16.mxu1 %v2711_v2  ;;  %v2733_v2 = vpack.c.bf16 %v1563_v58, %v1562_v57  ;;  %v2735_v51 = vpack.c.bf16 %v1581_v60, %v1580_v56  ;;  %v2771_v1 = vpack.c.bf16 %v1631_v10, %v1630_v0  ;;  %v1643_v57 = vld [vmem:[%s3955_s3 + $0x2e8] sm:$0xff]  ;;  %v2793_v56 = vpack.c.bf16 %v1625_v59, %v1624_v3 }
 0x5b3   :  { %v2797_v0 = vpack.c.bf16 %v1627_v5, %v1626_v4 }
 0x5b5   :  { %2714 = vmatpush3.bf16.msra.mxu1 %v2713_v12  ;;  %v2737_v12 = vpack.c.bf16 %v1565_v8, %v1564_v6  ;;  %v1645_v6 = vld [vmem:[%s3955_s3 + $0x2f8] sm:$0xff] }
 0x5b6   :  { %2716 = vmatprep.subr.bf16.mxu1 %v2715_v16  ;;  %v1614_v16 = vld [vmem:[%s3955_s3 + $0x200] sm:$0xff] }
 0x5b7   :  { %v2773_v11 = vpack.c.bf16 %v1615_v9, %v1614_v16 }
 0x5b9   :  { %2718 = vmatpush3.bf16.msra.mxu1 %v2717_v18  ;;  %v1616_v18 = vld [vmem:[%s3955_s3 + $0x210] sm:$0xff] }
 0x5ba   :  { %2720 = vmatprep.subr.bf16.mxu1 %v2719_v29  ;;  %v2946_v29 = vpop.eup %2945  ;;  %v2777_v21 = vpack.c.bf16 %v1617_v22, %v1616_v18 }
 0x5bb   :  { %v2948_v41 = vpop.eup %2947 }
 0x5bc   :  { %v2950_v33 = vpop.eup %2949 }
 0x5bd   :  { %2722 = vmatpush3.bf16.msra.mxu1 %v2721_v32  ;;  %v1619_v32 = vld [vmem:[%s3955_s3 + $0x228] sm:$0xff]  ;;  %v2952_v35 = vpop.eup %2951 }
 0x5be   :  { %2724 = vmatprep.subr.bf16.mxu1 %v2723_v36  ;;  %v1448_v36 = vsub.f32 %v3645_v25, %v1428_v7  ;;  %v2781_v37 = vpack.c.bf16 %v1619_v32, %v1618_v31  ;;  %v1638_v25 = vld [vmem:[%s3955_s3 + $0x2c0] sm:$0xff] }
 0x5c0   :  { %v1462_v23 = vmul.f32 %v1448_v36, %v1448_v36 }
 0x5c1   :  { %2726 = vmatpush3.bf16.msra.mxu1 %v2725_v24  ;;  %v1639_v24 = vld [vmem:[%s3955_s3 + $0x2c8] sm:$0xff] }
 0x5c2   :  { %2728 = vmatprep.subr.bf16.mxu1 %v2727_v19  ;;  %v2787_v19 = vpack.c.bf16 %v1639_v24, %v1638_v25  ;;  %v1512_v28 = vmul.f32 %v1492_v14, %v1462_v23 }
 0x5c4   :  { %v1530_v58 = vmul.f32 1.442695, %v1512_v28 }
 0x5c5   :  { %2730 = vmatpush3.bf16.msra.mxu1 %v2729_v53  ;;  %v1520_v53 = vmul.f32 %v3788_v47, %v1470_v46  ;;  %v1519_v47 = vmul.f32 %v1492_v14, %v1469_v50 }
 0x5c6   :  { %2732 = vmatprep.subr.bf16.mxu1 %v2731_v55  ;;  %v1642_v55 = vld [vmem:[%s3955_s3 + $0x2e0] sm:$0xff]  ;;  %2953 = vpow2.f32 %v1530_v58 }
 0x5c7   :  { %v1546_v60 = vmul.f32 1.442695, %v1520_v53  ;;  %v1544_v8 = vmul.f32 1.442695, %v1519_v47 }
 0x5c9   :  { %2734 = vmatpush3.bf16.msra.mxu1 %v2733_v2  ;;  %v2795_v2 = vpack.c.bf16 %v1643_v57, %v1642_v55  ;;  %2955 = vpow2.f32 %v1546_v60 }
 0x5ca   :  { %2736 = vmatprep.subr.bf16.mxu1 %v2735_v51  ;;  %v1644_v51 = vld [vmem:[%s3955_s3 + $0x2f0] sm:$0xff]  ;;  %2957 = vpow2.f32 %v1544_v8 }
 0x5cb   :  { %v2799_v10 = vpack.c.bf16 %v1645_v6, %v1644_v51 }
 0x5cd   :  { %2738 = vmatpush3.bf16.msra.mxu1 %v2737_v12  ;;  %v1628_v12 = vld [vmem:[%s3955_s3 + $0x270] sm:$0xff] }
 0x5ce   :  { %2772 = vmatprep.subr.bf16.mxu1 %v2771_v1  ;;  %v1629_v1 = vld [vmem:[%s3955_s3 + $0x278] sm:$0xff] }
 0x5cf   :  { %v2801_v16 = vpack.c.bf16 %v1629_v1, %v1628_v12 }
 0x5d0   :  { %1729 = vmatmul.mubr.f32.vlgmr.msra.gmra.mrb[12].mxu1 %v2946_v29  ;;  %v2954_v9 = vpop.eup %2953 }
 0x5d1   :  { %1733 = vmatprep.mubr.f32.mxu1 %v2948_v41  ;;  %2774 = vmatpush3.bf16.msra.mxu1 %v2773_v11 }
 0x5d2   :  { %2776 = vmatprep.subr.bf16.mxu1 %v2775_v15 }
 0x5d3   :  { %v2956_v17 = vpop.eup %2955 }
 0x5d4   :  { %1734 = vmatmul.mubr.f32.gmra.mrb[14].mxu1 %v2950_v33  ;;  %v2958_v26 = vpop.eup %2957 }
 0x5d5   :  { %2778 = vmatpush3.bf16.msra.mxu1 %v2777_v21  ;;  %1878 = vmatprep.mubr.f32.mxu1 %v2952_v35 }
 0x5d6   :  { %2780 = vmatprep.subr.bf16.mxu1 %v2779_v30 }
 0x5d9   :  { %2782 = vmatpush3.bf16.msra.mxu1 %v2781_v37 }
 0x5da   :  { %2784 = vmatprep.subr.bf16.mxu1 %v2783_v39 }
 0x5dd   :  { %2786 = vmatpush3.bf16.msra.mxu1 %v2785_v44 }
 0x5de   :  { %2788 = vmatprep.subr.bf16.mxu1 %v2787_v19 }
 0x5e1   :  { %2790 = vmatpush3.bf16.msra.mxu1 %v2789_v52 }
 0x5e2   :  { %2792 = vmatprep.subr.bf16.mxu1 %v2791_v54 }
 0x5e5   :  { %2794 = vmatpush3.bf16.msra.mxu1 %v2793_v56 }
 0x5e6   :  { %2796 = vmatprep.subr.bf16.mxu1 %v2795_v2 }
 0x5e9   :  { %2798 = vmatpush3.bf16.msra.mxu1 %v2797_v0 }
 0x5ea   :  { %2800 = vmatprep.subr.bf16.mxu1 %v2799_v10 }
 0x5ed   :  { %2802 = vmatpush3.bf16.msra.mxu1 %v2801_v16 }
 0x5ee   :  { %2549 = vmatprep.subr.mxu1 %v2995_v63 }
 0x5f0   :  { %1879 = vmatmul.mubr.f32.vlgmr.msra.gmra.mrb[16].mxu1 %v2954_v9 }
 0x5f1   :  { %1883 = vmatprep.mubr.f32.mxu1 %v2956_v17 }
 0x5f4   :  { %1884 = vmatmul.mubr.f32.gmra.mrb[18].mxu1 %v2958_v26 }
 0x5f5   :  { %2551 = vmatprep.mubr.msk.f32.mxu1 %vm2994_vm6, %v2995_v63  ;;  %vm2008_vm6 = vcmask 1041409  }
 0x629   :  { %v2308_v20 = vpop.f32.mrb[12].mxu0 }
 0x62a   :  { %v2309_v11 = vpop.f32.mrb[13].mxu0 }
 0x62b   :  { %v2310_v15 = vadd.f32 %v2309_v11, %v2308_v20 }
 0x641   :  { %v2311_v18 = vpop.f32.mrb[14].mxu0 }
 0x642   :  { %v2312_v22 = vpop.f32.mrb[15].mxu0 }
 0x643   :  { %v2313_v29 = vadd.f32 %v2312_v22, %v2311_v18  ;;  %v2003_v18 = vld [vmem:[%s3959_s7] sm:$0x1]  ;;  %v2005_v22 = vstv %s3960_s8 }
 0x648   :  { %v2548_v43 = vpop.f32.mrb[16].mxu0 }
 0x649   :  { %v1955_v27 = vpop.f32.mrb[17].mxu0 }
 0x683   :  { %v2521_v41 = vpop.f32.mrb[10].mxu1 }
 0x684   :  { %v1313_v7 = vpop.f32.mrb[11].mxu1 }
 0x6a3   :  { %v2270_v21 = vpop.f32.mrb[12].mxu1 }
 0x6a4   :  { %v2271_v30 = vpop.f32.mrb[13].mxu1 }
 0x6a5   :  { %v2272_v31 = vadd.f32 %v2271_v30, %v2270_v21 }
 0x6a7   :  { %v1806_v32 = vadd.f32 %v2310_v15, %v2272_v31  ;;  %v2273_v33 = vpop.f32.mrb[14].mxu1 }
 0x6a8   :  { %v2274_v34 = vpop.f32.mrb[15].mxu1 }
 0x6a9   :  { %v2275_v62 = vadd.f32 %v2274_v34, %v2273_v33 }
 0x6ab   :  { %v1811_v35 = vadd.f32 %v2313_v29, %v2275_v62 }
 0x6c3   :  { %v2346_v36 = vpop.f32.mrb[16].mxu1 }
 0x6c4   :  { %v2347_v63 = vpop.f32.mrb[17].mxu1 }
 0x6c5   :  { %v2348_v37 = vadd.f32 %v2347_v63, %v2346_v36 }
 0x6c7   :  { %v1881_v38 = vadd.f32 %v2348_v37, %v1806_v32  ;;  %v2349_v39 = vpop.f32.mrb[18].mxu1 }
 0x6c8   :  { %v2350_v45 = vpop.f32.mrb[19].mxu1 }
 0x6c9   :  { %v1956_v40 = vadd.f32 %v1955_v27, %v1881_v38  ;;  %v2351_v25 = vadd.f32 %v2350_v45, %v2349_v39 }
 0x6cb   :  { %v1964_v24 = vmul.f32 %v1956_v40, %v1313_v7  ;;  %v1967_v14 = vsel %vm1966_vm5, %v1956_v40, -inf  ;;  %v1886_v23 = vadd.f32 %v2351_v25, %v1811_v35 }
 0x6cc   :  { %v1968_v42 = vrot.slane %v1967_v14, 4 }
 0x6cd   :  { %v1983_v44 = vsel %vm1966_vm5, %v1964_v24, 0.0  ;;  %v1961_v46 = vadd.f32 %v2548_v43, %v1886_v23 }
 0x6ce   :  { %v1969_v19 = vmax.f32 %v1967_v14, %v1968_v42  ;;  %v1984_v48 = vrot.slane %v1983_v44, 4 }
 0x6cf   :  { %v1965_v49 = vmul.f32 %v2521_v41, %v1961_v46  ;;  %v1974_v13 = vsel %vm1966_vm5, %v1961_v46, -inf }
 0x6d0   :  { %v1970_v61 = vrot.slane %v1969_v19, 2  ;;  %v1985_v28 = vadd.f32 %v1984_v48, %v1983_v44  ;;  %v1975_v50 = vrot.slane %v1974_v13, 4 }
 0x6d1   :  { %v1990_v52 = vsel %vm1966_vm5, %v1965_v49, 0.0 }
 0x6d2   :  { %v1971_v53 = vmax.f32 %v1969_v19, %v1970_v61  ;;  %v1976_v54 = vmax.f32 %v1974_v13, %v1975_v50  ;;  %v1991_v3 = vrot.slane %v1990_v52, 4  ;;  %v1986_v59 = vrot.slane %v1985_v28, 2 }
 0x6d4   :  { %v1972_v55 = vrot.slane %v1971_v53, 1  ;;  %v1977_v57 = vrot.slane %v1976_v54, 2  ;;  %v1992_v58 = vadd.f32 %v1991_v3, %v1990_v52  ;;  %v1987_v60 = vadd.f32 %v1986_v59, %v1985_v28 }
 0x6d6   :  { %v1973_v47 = vmax.f32 %v1971_v53, %v1972_v55  ;;  %v1978_v56 = vmax.f32 %v1976_v54, %v1977_v57  ;;  %v1993_v2 = vrot.slane %v1992_v58, 2  ;;  %v1988_v6 = vrot.slane %v1987_v60, 1 }
 0x6d8   :  { %v1981_v4 = vadd.f32 1e-12, %v1973_v47  ;;  %v1979_v5 = vrot.slane %v1978_v56, 1  ;;  %v1994_v8 = vadd.f32 %v1993_v2, %v1992_v58  ;;  %v1989_v12 = vadd.f32 %v1988_v6, %v1987_v60 }
 0x6da   :  { %2959 = vrcp.f32 %v1981_v4  ;;  %v1980_v51 = vmax.f32 %v1978_v56, %v1979_v5  ;;  %v1995_v10 = vrot.slane %v1994_v8, 1  ;;  %v1997_v16 = vmul.f32 0.5, %v1989_v12 }
 0x6dc   :  { %v1982_v0 = vadd.f32 1e-12, %v1980_v51  ;;  %v1996_v1 = vadd.f32 %v1995_v10, %v1994_v8 }
 0x6de   :  { %2961 = vrcp.f32 %v1982_v0  ;;  %v1998_v26 = vmul.f32 0.5, %v1996_v1 }
 0x6e4   :  { %v2960_v9 = vpop.eup %2959 }
 0x6e5   :  { %v2000_v17 = vmul.f32 %v2960_v9, %v1997_v16 }
 0x6e8   :  { %v2962_v20 = vpop.eup %2961 }
 0x6e9   :  { %v2002_v11 = vmul.f32 %v2962_v20, %v1998_v26 }
 0x6eb   :  { %v2009_v15 = vsel %vm2008_vm6, %v2002_v11, %v2000_v17 }
 0x6ec   :  { %2550 = vmatpush3.xpose.msk.msra.mxu1 %vm1966_vm5, %v2009_v15 }
 0x6ef   :  { %2552 = vmatmul.mubr.msk.f32.vlgmr.msra.gmra.mrb[20].mxu1 %vm1966_vm5, %v2003_v18 }
 0x7c2   :  { %v2081_v29 = vpop.f32.mrb[20].mxu1 }
 0x7c3   :  { %v2082_v43 = vadd.f32 %v2081_v29, %v2005_v22  ;;  %v2553_v27 = vpop.f32.mrb[21].mxu1 }
 0x7c5   :  { %2963 = vtanh.f32 %v2082_v43 }
 0x7cf   :  { %v2964_v41 = vpop.eup %2963 }
 0x7d0   :  { %2087 = vst.msk [vmem:[#allocation3] sm:$0x1] %vm2086_vm15, %v2964_v41 }
 0x7d1   :  { %2976 = shalt.err (!%p2973_p4)
}
 0x7d2   :  { %s2977_s22 = scalar_lea.hbm %s3961_s9, 16 }
 0x7d3   :  { %p2978_p5 = scmp.ne.s32.totalorder %s3961_s9, %s2977_s22  ;;  %p2981_p6 = scmp.lt.u32.totalorder %s2977_s22, %s3961_s9 }
 0x7d5   :  { %p2983_p7 = pnand %p2981_p6, %p2978_p5 }
 0x7d7   :  { %2986 = shalt.err (!%p2983_p7)
}
 0x7d8   :  { %2097 = dma.vmem_to_hbm [thread:$0]  %s2095_s13, 16, %s3961_s9, [#allocation4]  }
 0x7d9   :  { %2987 = dma.done.wait [#allocation4], 16  }
 0x7da   :  { %2988 = vsyncadd [#allocation4], 4294967280 }
 0x7db   :  { %2101 = vsyncpa [#allocation4], 1 }

</bundles_post_ra>
